<compile_context>
chip_gen: v7x
topology: tpu7x:2x2x1
jax: 0.10.0
libtpu: 0.0.40
codegen_flags: <defaults>
</compile_context>

<pallas_src>
import math
import numpy as np
import jax
import jax.numpy as jnp
from jax.experimental import pallas as pl
from jax.experimental.pallas import tpu as pltpu

BETA_SCALE = 100.0
LOG2PI = float(math.log(2.0 * math.pi))
LGAMMA_BETA_SCALE = float(math.lgamma(BETA_SCALE))   # lgamma(a + b), a + b == 100

# ----------------------------------------------------------------------------
# Lanczos (g=7, 9 coefficients) log-gamma, restructured as a single rational
# P(z)/Q(z) so the hot loop has NO divides (review item #2).
# ----------------------------------------------------------------------------
_LANCZOS_G = 7.0
_LANCZOS_C = (
    0.99999999999980993,
    676.5203681218851,
    -1259.1392167224028,
    771.32342877765313,
    -176.61502916214059,
    12.507343278686905,
    -0.13857109526572012,
    9.9843695780195716e-6,
    1.5056327351493116e-7,
)


def _poly_expand(shifts):
    """Coefficients (highest degree first, float64) of prod_k (x + shifts[k])."""
    c = np.array([1.0], dtype=np.float64)
    for s in shifts:
        c = np.convolve(c, np.array([1.0, float(s)], dtype=np.float64))
    return c


# Offline: A(z) = c0 + sum_i c_i / (z + i)  ==  P(z) / Q(z)
_SHIFTS = np.arange(1.0, 9.0)
_Q64 = _poly_expand(_SHIFTS)                          # degree 8, all-positive coeffs
_P64 = _LANCZOS_C[0] * _Q64.copy()
for _i in range(1, 9):
    _P64[1:] += _LANCZOS_C[_i] * _poly_expand(np.delete(_SHIFTS, _i - 1))
_P_COEF = tuple(float(c) for c in _P64)
_Q_COEF = tuple(float(c) for c in _Q64)


def _horner(coefs, x):
    acc = jnp.full_like(x, coefs[0])
    for c in coefs[1:]:
        acc = acc * x + c                              # VPU only
    return acc


def _lgamma_pair_sum(a, b):
    """lgamma(a) + lgamma(b), elementwise, for 0 < a, b <= ~200 (float32).

    Uses lgamma(z) = lgamma(z+1) - log(z) so the Lanczos series argument is
    always >= 1, and the rational form P/Q so there are no divides.  Logs of
    the two operands are fused into logs of products (P*P < 1e33, safely inside
    the f32 range), leaving 5 EUP logs for the pair instead of 22 EUP ops.
    """
    ta = a + (_LANCZOS_G + 0.5)
    tb = b + (_LANCZOS_G + 0.5)
    pa = _horner(_P_COEF, a)
    qa = _horner(_Q_COEF, a)
    pb = _horner(_P_COEF, b)
    qb = _horner(_Q_COEF, b)
    return (LOG2PI
            + (a + 0.5) * jnp.log(ta) + (b + 0.5) * jnp.log(tb)
            - ta - tb
            + jnp.log(pa * pb)
            - jnp.log(qa * qb)
            - jnp.log(a * b))


# ----------------------------------------------------------------------------
# Kernel
# ----------------------------------------------------------------------------
def vae_kernel(warmup_ref, x_ref, eps_ref, w_enc_ref, b_enc_ref,
               w_dec_ref, b_dec_ref, alpha_ref, stats_ref):
    x = x_ref[...]                      # (tile_b, D) f32, flattened pixels in (0,1)
    eps = eps_ref[...]                  # (tile_b, Z) f32 reparameterization noise
    warmup = warmup_ref[0, 0]
    Z = eps.shape[-1]
    tb = x.shape[0]

    # ---- encoder: one fused MXU pass for [mu | logvar] (review item #4) ----
    enc = jnp.dot(x, w_enc_ref[...], preferred_element_type=jnp.float32) + b_enc_ref[...]
    mu = enc[:, :Z]
    logvar = enc[:, Z:]
    std = jnp.exp(0.5 * logvar)
    z = mu + std * eps

    # log q(z|x) = sum_j -0.5*(log2pi + logvar_j + ((z-mu)/std)^2), (z-mu)/std == eps
    logqz = jnp.sum(-0.5 * (LOG2PI + logvar + eps * eps), axis=-1, keepdims=True)
    # log p(z): standard normal prior
    logpz = jnp.sum(-0.5 * (LOG2PI + z * z), axis=-1, keepdims=True)

    # ---- decoder (MXU) + sigmoid via approx reciprocal + Newton (review #3) ----
    x_hat = jnp.dot(z, w_dec_ref[...], preferred_element_type=jnp.float32) + b_dec_ref[...]
    den = 1.0 + jnp.exp(-x_hat)
    r = pl.reciprocal(den, approx=True)
    r = r * (2.0 - den * r)             # Newton refinements: near-exact sigmoid,
    r = r * (2.0 - den * r)             # refinement muls land on the idle VPU slot
    alpha = r

    # ---- Beta(alpha*100, (1-alpha)*100).log_prob(x) ----
    a = alpha * BETA_SCALE
    b = BETA_SCALE - a                  # a + b == 100 exactly
    log_beta_fn = _lgamma_pair_sum(a, b) - LGAMMA_BETA_SCALE   # review item #1
    logpxz_el = (a - 1.0) * jnp.log(x) + (b - 1.0) * jnp.log(1.0 - x) - log_beta_fn
    logpxz = jnp.sum(logpxz_el, axis=-1, keepdims=True)

    elbo = logpxz + logpz - logqz
    welbo = logpxz + warmup * (logpz - logqz)

    alpha_ref[...] = alpha
    # Packed per-sample stats (one output slab instead of five (B,1) outputs).
    stats_ref[:, 0:1] = logpxz
    stats_ref[:, 1:2] = logqz
    stats_ref[:, 2:3] = logpz
    stats_ref[:, 3:4] = elbo
    stats_ref[:, 4:5] = welbo
    stats_ref[:, 5:8] = jnp.zeros((tb, 3), jnp.float32)


# ----------------------------------------------------------------------------
# Wrapper
# ----------------------------------------------------------------------------
def _pick_tile_b(B, D):
    """Batch tile: bounded VMEM working set (v7x 64 MiB), prefer >= 2 grid steps."""
    budget_rows = max(8, (24 << 20) // (D * 4 * 12))   # ~12 live f32 (tile_b, D) slabs
    for cand in (512, 256, 128, 64, 32, 16, 8):
        if cand <= budget_rows and cand <= max(8, B // 2) and B % cand == 0:
            return cand
    return B                                            # small / odd batches: one block


def vae_forward(x_nchw, eps, params, warmup=1.0):
    B = x_nchw.shape[0]
    D = int(np.prod(x_nchw.shape[1:]))
    Z = eps.shape[1]
    x_flat = x_nchw.reshape(B, D).astype(jnp.float32)
    eps = eps.astype(jnp.float32)
    warm = jnp.full((1, 1), warmup, dtype=jnp.float32)

    # Fused encoder parameters: one (D, 2Z) matmul instead of two (D, Z) ones.
    w_enc = jnp.concatenate([params["W_mu"], params["W_lv"]], axis=1)   # (D, 2Z)
    b_enc = jnp.concatenate([params["b_mu"], params["b_lv"]], axis=1)   # (1, 2Z)
    w_dec = params["W_dec"]                                             # (Z, D)
    b_dec = params["b_dec"]                                             # (1, D)

    tile_b = _pick_tile_b(B, D)
    grid = (B // tile_b,)

    # VMEM budget: resident weights + double-buffered tiles + temporaries headroom.
    resident_b = 4 * (w_enc.size + b_enc.size + w_dec.size + b_dec.size)
    tile_bytes = 4 * tile_b * (2 * D + Z + 8)
    vmem_limit = int(min(max(resident_b + 4 * tile_bytes + (12 << 20), 32 << 20),
                         64 << 20))

    smem = pl.BlockSpec(memory_space=pltpu.MemorySpace.SMEM)

    def row_tile(cols):
        return pl.BlockSpec((tile_b, cols), lambda i: (i, 0))

    def resident(shape):                 # full weight, constant block index -> stays in VMEM
        return pl.BlockSpec(shape, lambda i: (0, 0))

    grid_spec = pltpu.PrefetchScalarGridSpec(
        num_scalar_prefetch=0,
        grid=grid,
        in_specs=[
            smem,                        # warmup scalar
            row_tile(D),                 # x        (pipelined over batch)
            row_tile(Z),                 # eps
            resident(w_enc.shape),       # encoder weight
            resident(b_enc.shape),
            resident(w_dec.shape),       # decoder weight
            resident(b_dec.shape),
        ],
        out_specs=(
            row_tile(D),                 # alpha (sigmoid(x_hat)), lane-dense
            row_tile(8),                 # packed per-sample stats
        ),
    )

    # NOTE: for very large D (e.g. 3*128*128 CLEVR frames) the decoder/Beta phase
    # could additionally be tiled over D with a pl.when-accumulated logpxz; the
    # adaptive batch tile above already keeps the working set within VMEM.
    alpha, stats = pl.pallas_call(
        vae_kernel,
        out_shape=(jax.ShapeDtypeStruct((B, D), jnp.float32),
                   jax.ShapeDtypeStruct((B, 8), jnp.float32)),
        grid_spec=grid_spec,
        compiler_params=pltpu.CompilerParams(
            dimension_semantics=("parallel",),       # v7x: shard batch tiles across TCs
            vmem_limit_bytes=vmem_limit),
    )(warm, x_flat, eps, w_enc, b_enc, w_dec, b_dec)

    outputs = {
        "logpxz": jnp.mean(stats[:, 0]),
        "logqz": jnp.mean(stats[:, 1]),
        "logpz": jnp.mean(stats[:, 2]),
        "elbo": jnp.mean(stats[:, 3]),
        "welbo": jnp.mean(stats[:, 4]),
        "x_hat": alpha.reshape(x_nchw.shape),
    }
    return outputs


# ----------------------------------------------------------------------------
# Pure-JAX reference of the same math (uses jax.scipy gammaln)
# ----------------------------------------------------------------------------
def _reference_forward(x_nchw, eps, params, warmup=1.0):
    B = x_nchw.shape[0]
    x = x_nchw.reshape(B, -1).astype(jnp.float32)
    mu = x @ params["W_mu"] + params["b_mu"]
    logvar = x @ params["W_lv"] + params["b_lv"]
    std = jnp.exp(0.5 * logvar)
    z = mu + std * eps
    logqz = jnp.sum(-0.5 * (LOG2PI + logvar + eps * eps), axis=-1)
    logpz = jnp.sum(-0.5 * (LOG2PI + z * z), axis=-1)
    x_hat = z @ params["W_dec"] + params["b_dec"]
    alpha = 1.0 / (1.0 + jnp.exp(-x_hat))
    a = alpha * BETA_SCALE
    b = (1.0 - alpha) * BETA_SCALE
    gln = jax.scipy.special.gammaln
    logpxz_el = (a - 1.0) * jnp.log(x) + (b - 1.0) * jnp.log(1.0 - x) \
        - (gln(a) + gln(b) - gln(a + b))
    logpxz = jnp.sum(logpxz_el, axis=-1)
    return {
        "logpxz": jnp.mean(logpxz),
        "logqz": jnp.mean(logqz),
        "logpz": jnp.mean(logpz),
        "elbo": jnp.mean(logpxz + logpz - logqz),
        "welbo": jnp.mean(logpxz + warmup * (logpz - logqz)),
        "x_hat": alpha.reshape(x_nchw.shape),
    }


if __name__ == "__main__":
    # Small shapes consistent with the forward: NCHW image batch, latent dim Z.
    # B=16 so the batch grid actually runs two pipelined tiles of 8 rows.
    B, C, H, W = 16, 4, 16, 16
    D = C * H * W          # 1024 flattened pixels
    Z = 32                 # latent dimension

    key = jax.random.PRNGKey(0)
    k_x, k_eps, k_wmu, k_wlv, k_wdec = jax.random.split(key, 5)

    # Image-like data strictly inside (0, 1) so the Beta log-prob is finite.
    x = jax.random.uniform(k_x, (B, C, H, W), jnp.float32, minval=0.05, maxval=0.95)
    eps = jax.random.normal(k_eps, (B, Z), jnp.float32)

    # Deterministic synthetic parameters (no checkpoint loading).
    params = {
        "W_mu": 0.02 * jax.random.normal(k_wmu, (D, Z), jnp.float32),
        "b_mu": jnp.zeros((1, Z), jnp.float32),
        "W_lv": 0.02 * jax.random.normal(k_wlv, (D, Z), jnp.float32),
        "b_lv": jnp.zeros((1, Z), jnp.float32),
        "W_dec": 0.02 * jax.random.normal(k_wdec, (Z, D), jnp.float32),
        "b_dec": jnp.zeros((1, D), jnp.float32),
    }

    out = vae_forward(x, eps, params, warmup=1.0)
    out = jax.tree_util.tree_map(jax.block_until_ready, out)

    # Sanity check against the pure-JAX reference.
    ref = _reference_forward(x, eps, params, warmup=1.0)
    for name in ("logpxz", "logqz", "logpz", "elbo", "welbo"):
        np.testing.assert_allclose(np.asarray(out[name]), np.asarray(ref[name]),
                                   rtol=5e-3, atol=0.5)
    np.testing.assert_allclose(np.asarray(out["x_hat"]), np.asarray(ref["x_hat"]),
                               rtol=1e-4, atol=1e-4)
    assert all(np.isfinite(np.asarray(out[k])).all() for k in out)

    print("KERNEL_OK")
</pallas_src>

<mosaic_0001>
module attributes {stable_mosaic.version = 11 : i64} {
  func.func @vae_kernel(%arg0: i32, %arg1: memref<1x1xf32, #tpu.memory_space<smem>>, %arg2: memref<8x1024xf32, #tpu.memory_space<vmem>>, %arg3: memref<8x32xf32, #tpu.memory_space<vmem>>, %arg4: memref<1024x64xf32, #tpu.memory_space<vmem>>, %arg5: memref<1x64xf32, #tpu.memory_space<vmem>>, %arg6: memref<32x1024xf32, #tpu.memory_space<vmem>>, %arg7: memref<1x1024xf32, #tpu.memory_space<vmem>>, %arg8: memref<8x1024xf32, #tpu.memory_space<vmem>>, %arg9: memref<8x8xf32, #tpu.memory_space<vmem>>) attributes {dimension_semantics = [#tpu.dimension_semantics<parallel>], iteration_bounds = array<i64: 2>, scalar_prefetch = 0 : i64, scratch_operands = 0 : i64, tpu.core_type = #tpu.core_type<tc>, window_params = [{transform_indices = @transform_0, window_bounds = array<i64: 1, 1>}, {transform_indices = @transform_1, window_bounds = array<i64: 8, 1024>}, {transform_indices = @transform_2, window_bounds = array<i64: 8, 32>}, {pipeline_mode = #tpu.pipeline_mode<synchronous>, transform_indices = @transform_3, window_bounds = array<i64: 1024, 64>}, {pipeline_mode = #tpu.pipeline_mode<synchronous>, transform_indices = @transform_4, window_bounds = array<i64: 1, 64>}, {pipeline_mode = #tpu.pipeline_mode<synchronous>, transform_indices = @transform_5, window_bounds = array<i64: 32, 1024>}, {pipeline_mode = #tpu.pipeline_mode<synchronous>, transform_indices = @transform_6, window_bounds = array<i64: 1, 1024>}, {transform_indices = @transform_7, window_bounds = array<i64: 8, 1024>}, {transform_indices = @transform_8, window_bounds = array<i64: 8, 8>}]} {
    %c0 = arith.constant 0 : index
    %c0_0 = arith.constant 0 : index
    %0 = vector.load %arg2[%c0, %c0_0] : memref<8x1024xf32, #tpu.memory_space<vmem>>, vector<8x1024xf32>
    %c0_1 = arith.constant 0 : index
    %c0_2 = arith.constant 0 : index
    %1 = vector.load %arg3[%c0_1, %c0_2] : memref<8x32xf32, #tpu.memory_space<vmem>>, vector<8x32xf32>
    %c0_3 = arith.constant 0 : index
    %c0_4 = arith.constant 0 : index
    %2 = memref.load %arg1[%c0_3, %c0_4] : memref<1x1xf32, #tpu.memory_space<smem>>
    %c0_5 = arith.constant 0 : index
    %c0_6 = arith.constant 0 : index
    %3 = vector.load %arg4[%c0_5, %c0_6] : memref<1024x64xf32, #tpu.memory_space<vmem>>, vector<1024x64xf32>
    %cst = arith.constant dense<0.000000e+00> : vector<8x64xf32>
    %4 = tpu.matmul %0, %3, %cst {dimension_numbers = #tpu.dot_dimension_numbers<[1], [0], [0], [1], [0, 0, 1, 1], [], []>} : vector<8x1024xf32>, vector<1024x64xf32>, vector<8x64xf32> -> vector<8x64xf32>
    %c0_7 = arith.constant 0 : index
    %c0_8 = arith.constant 0 : index
    %5 = vector.load %arg5[%c0_7, %c0_8] : memref<1x64xf32, #tpu.memory_space<vmem>>, vector<1x64xf32>
    %6 = vector.broadcast %5 : vector<1x64xf32> to vector<8x64xf32>
    %7 = arith.addf %4, %6 : vector<8x64xf32>
    %8 = vector.extract_strided_slice %7 {offsets = [0, 0], sizes = [8, 32], strides = [1, 1]} : vector<8x64xf32> to vector<8x32xf32>
    %9 = vector.extract_strided_slice %7 {offsets = [0, 32], sizes = [8, 32], strides = [1, 1]} : vector<8x64xf32> to vector<8x32xf32>
    %cst_9 = arith.constant 5.000000e-01 : f32
    %10 = vector.broadcast %cst_9 : f32 to vector<8x32xf32>
    %11 = arith.mulf %10, %9 : vector<8x32xf32>
    %12 = math.exp %11 : vector<8x32xf32>
    %13 = arith.mulf %12, %1 : vector<8x32xf32>
    %14 = arith.addf %8, %13 : vector<8x32xf32>
    %cst_10 = arith.constant 1.83787704 : f32
    %15 = vector.broadcast %cst_10 : f32 to vector<8x32xf32>
    %16 = arith.addf %15, %9 : vector<8x32xf32>
    %17 = arith.mulf %1, %1 : vector<8x32xf32>
    %18 = arith.addf %16, %17 : vector<8x32xf32>
    %cst_11 = arith.constant -5.000000e-01 : f32
    %19 = vector.broadcast %cst_11 : f32 to vector<8x32xf32>
    %20 = arith.mulf %19, %18 : vector<8x32xf32>
    %cst_12 = arith.constant dense<0.000000e+00> : vector<8xf32>
    %21 = vector.multi_reduction <add>, %20, %cst_12 [1] : vector<8x32xf32> to vector<8xf32>
    %22 = vector.shape_cast %21 : vector<8xf32> to vector<8x1xf32>
    %23 = arith.mulf %14, %14 : vector<8x32xf32>
    %cst_13 = arith.constant 1.83787704 : f32
    %24 = vector.broadcast %cst_13 : f32 to vector<8x32xf32>
    %25 = arith.addf %24, %23 : vector<8x32xf32>
    %cst_14 = arith.constant -5.000000e-01 : f32
    %26 = vector.broadcast %cst_14 : f32 to vector<8x32xf32>
    %27 = arith.mulf %26, %25 : vector<8x32xf32>
    %cst_15 = arith.constant dense<0.000000e+00> : vector<8xf32>
    %28 = vector.multi_reduction <add>, %27, %cst_15 [1] : vector<8x32xf32> to vector<8xf32>
    %29 = vector.shape_cast %28 : vector<8xf32> to vector<8x1xf32>
    %c0_16 = arith.constant 0 : index
    %c0_17 = arith.constant 0 : index
    %30 = vector.load %arg6[%c0_16, %c0_17] : memref<32x1024xf32, #tpu.memory_space<vmem>>, vector<32x1024xf32>
    %cst_18 = arith.constant dense<0.000000e+00> : vector<8x1024xf32>
    %31 = tpu.matmul %14, %30, %cst_18 {dimension_numbers = #tpu.dot_dimension_numbers<[1], [0], [0], [1], [0, 0, 1, 1], [], []>} : vector<8x32xf32>, vector<32x1024xf32>, vector<8x1024xf32> -> vector<8x1024xf32>
    %c0_19 = arith.constant 0 : index
    %c0_20 = arith.constant 0 : index
    %32 = vector.load %arg7[%c0_19, %c0_20] : memref<1x1024xf32, #tpu.memory_space<vmem>>, vector<1x1024xf32>
    %33 = vector.broadcast %32 : vector<1x1024xf32> to vector<8x1024xf32>
    %34 = arith.addf %31, %33 : vector<8x1024xf32>
    %cst_21 = arith.constant 0.000000e+00 : f32
    %35 = vector.broadcast %cst_21 : f32 to vector<8x1024xf32>
    %36 = arith.subf %35, %34 : vector<8x1024xf32>
    %37 = math.exp %36 : vector<8x1024xf32>
    %cst_22 = arith.constant 1.000000e+00 : f32
    %38 = vector.broadcast %cst_22 : f32 to vector<8x1024xf32>
    %39 = arith.addf %38, %37 : vector<8x1024xf32>
    %40 = tpu.reciprocal %39 {approx = true} : vector<8x1024xf32> -> vector<8x1024xf32>
    %41 = arith.mulf %39, %40 : vector<8x1024xf32>
    %cst_23 = arith.constant 2.000000e+00 : f32
    %42 = vector.broadcast %cst_23 : f32 to vector<8x1024xf32>
    %43 = arith.subf %42, %41 : vector<8x1024xf32>
    %44 = arith.mulf %40, %43 : vector<8x1024xf32>
    %45 = arith.mulf %39, %44 : vector<8x1024xf32>
    %cst_24 = arith.constant 2.000000e+00 : f32
    %46 = vector.broadcast %cst_24 : f32 to vector<8x1024xf32>
    %47 = arith.subf %46, %45 : vector<8x1024xf32>
    %48 = arith.mulf %44, %47 : vector<8x1024xf32>
    %cst_25 = arith.constant 1.000000e+02 : f32
    %49 = vector.broadcast %cst_25 : f32 to vector<8x1024xf32>
    %50 = arith.mulf %48, %49 : vector<8x1024xf32>
    %cst_26 = arith.constant 1.000000e+02 : f32
    %51 = vector.broadcast %cst_26 : f32 to vector<8x1024xf32>
    %52 = arith.subf %51, %50 : vector<8x1024xf32>
    %cst_27 = arith.constant 7.500000e+00 : f32
    %53 = vector.broadcast %cst_27 : f32 to vector<8x1024xf32>
    %54 = arith.addf %50, %53 : vector<8x1024xf32>
    %cst_28 = arith.constant 7.500000e+00 : f32
    %55 = vector.broadcast %cst_28 : f32 to vector<8x1024xf32>
    %56 = arith.addf %52, %55 : vector<8x1024xf32>
    %cst_29 = arith.constant 1.000000e+00 : f32
    %57 = vector.broadcast %cst_29 : f32 to vector<8x1024xf32>
    %58 = arith.mulf %57, %50 : vector<8x1024xf32>
    %cst_30 = arith.constant 60.4583321 : f32
    %59 = vector.broadcast %cst_30 : f32 to vector<8x1024xf32>
    %60 = arith.addf %58, %59 : vector<8x1024xf32>
    %61 = arith.mulf %60, %50 : vector<8x1024xf32>
    %cst_31 = arith.constant 1599.04248 : f32
    %62 = vector.broadcast %cst_31 : f32 to vector<8x1024xf32>
    %63 = arith.addf %61, %62 : vector<8x1024xf32>
    %64 = arith.mulf %63, %50 : vector<8x1024xf32>
    %cst_32 = arith.constant 24165.5098 : f32
    %65 = vector.broadcast %cst_32 : f32 to vector<8x1024xf32>
    %66 = arith.addf %64, %65 : vector<8x1024xf32>
    %67 = arith.mulf %66, %50 : vector<8x1024xf32>
    %cst_33 = arith.constant 228235.219 : f32
    %68 = vector.broadcast %cst_33 : f32 to vector<8x1024xf32>
    %69 = arith.addf %67, %68 : vector<8x1024xf32>
    %70 = arith.mulf %69, %50 : vector<8x1024xf32>
    %cst_34 = arith.constant 1379496.25 : f32
    %71 = vector.broadcast %cst_34 : f32 to vector<8x1024xf32>
    %72 = arith.addf %70, %71 : vector<8x1024xf32>
    %73 = arith.mulf %72, %50 : vector<8x1024xf32>
    %cst_35 = arith.constant 0x4A9F05EA : f32
    %74 = vector.broadcast %cst_35 : f32 to vector<8x1024xf32>
    %75 = arith.addf %73, %74 : vector<8x1024xf32>
    %76 = arith.mulf %75, %50 : vector<8x1024xf32>
    %cst_36 = arith.constant 0x4B2B9D51 : f32
    %77 = vector.broadcast %cst_36 : f32 to vector<8x1024xf32>
    %78 = arith.addf %76, %77 : vector<8x1024xf32>
    %79 = arith.mulf %78, %50 : vector<8x1024xf32>
    %cst_37 = arith.constant 0x4B220ADA : f32
    %80 = vector.broadcast %cst_37 : f32 to vector<8x1024xf32>
    %81 = arith.addf %79, %80 : vector<8x1024xf32>
    %cst_38 = arith.constant 1.000000e+00 : f32
    %82 = vector.broadcast %cst_38 : f32 to vector<8x1024xf32>
    %83 = arith.mulf %82, %50 : vector<8x1024xf32>
    %cst_39 = arith.constant 3.600000e+01 : f32
    %84 = vector.broadcast %cst_39 : f32 to vector<8x1024xf32>
    %85 = arith.addf %83, %84 : vector<8x1024xf32>
    %86 = arith.mulf %85, %50 : vector<8x1024xf32>
    %cst_40 = arith.constant 5.460000e+02 : f32
    %87 = vector.broadcast %cst_40 : f32 to vector<8x1024xf32>
    %88 = arith.addf %86, %87 : vector<8x1024xf32>
    %89 = arith.mulf %88, %50 : vector<8x1024xf32>
    %cst_41 = arith.constant 4.536000e+03 : f32
    %90 = vector.broadcast %cst_41 : f32 to vector<8x1024xf32>
    %91 = arith.addf %89, %90 : vector<8x1024xf32>
    %92 = arith.mulf %91, %50 : vector<8x1024xf32>
    %cst_42 = arith.constant 2.244900e+04 : f32
    %93 = vector.broadcast %cst_42 : f32 to vector<8x1024xf32>
    %94 = arith.addf %92, %93 : vector<8x1024xf32>
    %95 = arith.mulf %94, %50 : vector<8x1024xf32>
    %cst_43 = arith.constant 6.728400e+04 : f32
    %96 = vector.broadcast %cst_43 : f32 to vector<8x1024xf32>
    %97 = arith.addf %95, %96 : vector<8x1024xf32>
    %98 = arith.mulf %97, %50 : vector<8x1024xf32>
    %cst_44 = arith.constant 1.181240e+05 : f32
    %99 = vector.broadcast %cst_44 : f32 to vector<8x1024xf32>
    %100 = arith.addf %98, %99 : vector<8x1024xf32>
    %101 = arith.mulf %100, %50 : vector<8x1024xf32>
    %cst_45 = arith.constant 1.095840e+05 : f32
    %102 = vector.broadcast %cst_45 : f32 to vector<8x1024xf32>
    %103 = arith.addf %101, %102 : vector<8x1024xf32>
    %104 = arith.mulf %103, %50 : vector<8x1024xf32>
    %cst_46 = arith.constant 4.032000e+04 : f32
    %105 = vector.broadcast %cst_46 : f32 to vector<8x1024xf32>
    %106 = arith.addf %104, %105 : vector<8x1024xf32>
    %cst_47 = arith.constant 1.000000e+00 : f32
    %107 = vector.broadcast %cst_47 : f32 to vector<8x1024xf32>
    %108 = arith.mulf %107, %52 : vector<8x1024xf32>
    %cst_48 = arith.constant 60.4583321 : f32
    %109 = vector.broadcast %cst_48 : f32 to vector<8x1024xf32>
    %110 = arith.addf %108, %109 : vector<8x1024xf32>
    %111 = arith.mulf %110, %52 : vector<8x1024xf32>
    %cst_49 = arith.constant 1599.04248 : f32
    %112 = vector.broadcast %cst_49 : f32 to vector<8x1024xf32>
    %113 = arith.addf %111, %112 : vector<8x1024xf32>
    %114 = arith.mulf %113, %52 : vector<8x1024xf32>
    %cst_50 = arith.constant 24165.5098 : f32
    %115 = vector.broadcast %cst_50 : f32 to vector<8x1024xf32>
    %116 = arith.addf %114, %115 : vector<8x1024xf32>
    %117 = arith.mulf %116, %52 : vector<8x1024xf32>
    %cst_51 = arith.constant 228235.219 : f32
    %118 = vector.broadcast %cst_51 : f32 to vector<8x1024xf32>
    %119 = arith.addf %117, %118 : vector<8x1024xf32>
    %120 = arith.mulf %119, %52 : vector<8x1024xf32>
    %cst_52 = arith.constant 1379496.25 : f32
    %121 = vector.broadcast %cst_52 : f32 to vector<8x1024xf32>
    %122 = arith.addf %120, %121 : vector<8x1024xf32>
    %123 = arith.mulf %122, %52 : vector<8x1024xf32>
    %cst_53 = arith.constant 0x4A9F05EA : f32
    %124 = vector.broadcast %cst_53 : f32 to vector<8x1024xf32>
    %125 = arith.addf %123, %124 : vector<8x1024xf32>
    %126 = arith.mulf %125, %52 : vector<8x1024xf32>
    %cst_54 = arith.constant 0x4B2B9D51 : f32
    %127 = vector.broadcast %cst_54 : f32 to vector<8x1024xf32>
    %128 = arith.addf %126, %127 : vector<8x1024xf32>
    %129 = arith.mulf %128, %52 : vector<8x1024xf32>
    %cst_55 = arith.constant 0x4B220ADA : f32
    %130 = vector.broadcast %cst_55 : f32 to vector<8x1024xf32>
    %131 = arith.addf %129, %130 : vector<8x1024xf32>
    %cst_56 = arith.constant 1.000000e+00 : f32
    %132 = vector.broadcast %cst_56 : f32 to vector<8x1024xf32>
    %133 = arith.mulf %132, %52 : vector<8x1024xf32>
    %cst_57 = arith.constant 3.600000e+01 : f32
    %134 = vector.broadcast %cst_57 : f32 to vector<8x1024xf32>
    %135 = arith.addf %133, %134 : vector<8x1024xf32>
    %136 = arith.mulf %135, %52 : vector<8x1024xf32>
    %cst_58 = arith.constant 5.460000e+02 : f32
    %137 = vector.broadcast %cst_58 : f32 to vector<8x1024xf32>
    %138 = arith.addf %136, %137 : vector<8x1024xf32>
    %139 = arith.mulf %138, %52 : vector<8x1024xf32>
    %cst_59 = arith.constant 4.536000e+03 : f32
    %140 = vector.broadcast %cst_59 : f32 to vector<8x1024xf32>
    %141 = arith.addf %139, %140 : vector<8x1024xf32>
    %142 = arith.mulf %141, %52 : vector<8x1024xf32>
    %cst_60 = arith.constant 2.244900e+04 : f32
    %143 = vector.broadcast %cst_60 : f32 to vector<8x1024xf32>
    %144 = arith.addf %142, %143 : vector<8x1024xf32>
    %145 = arith.mulf %144, %52 : vector<8x1024xf32>
    %cst_61 = arith.constant 6.728400e+04 : f32
    %146 = vector.broadcast %cst_61 : f32 to vector<8x1024xf32>
    %147 = arith.addf %145, %146 : vector<8x1024xf32>
    %148 = arith.mulf %147, %52 : vector<8x1024xf32>
    %cst_62 = arith.constant 1.181240e+05 : f32
    %149 = vector.broadcast %cst_62 : f32 to vector<8x1024xf32>
    %150 = arith.addf %148, %149 : vector<8x1024xf32>
    %151 = arith.mulf %150, %52 : vector<8x1024xf32>
    %cst_63 = arith.constant 1.095840e+05 : f32
    %152 = vector.broadcast %cst_63 : f32 to vector<8x1024xf32>
    %153 = arith.addf %151, %152 : vector<8x1024xf32>
    %154 = arith.mulf %153, %52 : vector<8x1024xf32>
    %cst_64 = arith.constant 4.032000e+04 : f32
    %155 = vector.broadcast %cst_64 : f32 to vector<8x1024xf32>
    %156 = arith.addf %154, %155 : vector<8x1024xf32>
    %cst_65 = arith.constant 5.000000e-01 : f32
    %157 = vector.broadcast %cst_65 : f32 to vector<8x1024xf32>
    %158 = arith.addf %50, %157 : vector<8x1024xf32>
    %159 = math.log %54 : vector<8x1024xf32>
    %160 = arith.mulf %158, %159 : vector<8x1024xf32>
    %cst_66 = arith.constant 1.83787704 : f32
    %161 = vector.broadcast %cst_66 : f32 to vector<8x1024xf32>
    %162 = arith.addf %161, %160 : vector<8x1024xf32>
    %cst_67 = arith.constant 5.000000e-01 : f32
    %163 = vector.broadcast %cst_67 : f32 to vector<8x1024xf32>
    %164 = arith.addf %52, %163 : vector<8x1024xf32>
    %165 = math.log %56 : vector<8x1024xf32>
    %166 = arith.mulf %164, %165 : vector<8x1024xf32>
    %167 = arith.addf %162, %166 : vector<8x1024xf32>
    %168 = arith.subf %167, %54 : vector<8x1024xf32>
    %169 = arith.subf %168, %56 : vector<8x1024xf32>
    %170 = arith.mulf %81, %131 : vector<8x1024xf32>
    %171 = math.log %170 : vector<8x1024xf32>
    %172 = arith.addf %169, %171 : vector<8x1024xf32>
    %173 = arith.mulf %106, %156 : vector<8x1024xf32>
    %174 = math.log %173 : vector<8x1024xf32>
    %175 = arith.subf %172, %174 : vector<8x1024xf32>
    %176 = arith.mulf %50, %52 : vector<8x1024xf32>
    %177 = math.log %176 : vector<8x1024xf32>
    %178 = arith.subf %175, %177 : vector<8x1024xf32>
    %cst_68 = arith.constant 359.134216 : f32
    %179 = vector.broadcast %cst_68 : f32 to vector<8x1024xf32>
    %180 = arith.subf %178, %179 : vector<8x1024xf32>
    %cst_69 = arith.constant 1.000000e+00 : f32
    %181 = vector.broadcast %cst_69 : f32 to vector<8x1024xf32>
    %182 = arith.subf %50, %181 : vector<8x1024xf32>
    %183 = math.log %0 : vector<8x1024xf32>
    %184 = arith.mulf %182, %183 : vector<8x1024xf32>
    %cst_70 = arith.constant 1.000000e+00 : f32
    %185 = vector.broadcast %cst_70 : f32 to vector<8x1024xf32>
    %186 = arith.subf %52, %185 : vector<8x1024xf32>
    %cst_71 = arith.constant 1.000000e+00 : f32
    %187 = vector.broadcast %cst_71 : f32 to vector<8x1024xf32>
    %188 = arith.subf %187, %0 : vector<8x1024xf32>
    %189 = math.log %188 : vector<8x1024xf32>
    %190 = arith.mulf %186, %189 : vector<8x1024xf32>
    %191 = arith.addf %184, %190 : vector<8x1024xf32>
    %192 = arith.subf %191, %180 : vector<8x1024xf32>
    %cst_72 = arith.constant dense<0.000000e+00> : vector<8xf32>
    %193 = vector.multi_reduction <add>, %192, %cst_72 [1] : vector<8x1024xf32> to vector<8xf32>
    %194 = vector.shape_cast %193 : vector<8xf32> to vector<8x1xf32>
    %195 = arith.addf %194, %29 : vector<8x1xf32>
    %196 = arith.subf %195, %22 : vector<8x1xf32>
    %197 = arith.subf %29, %22 : vector<8x1xf32>
    %198 = vector.broadcast %2 : f32 to vector<8x1xf32>
    %199 = arith.mulf %198, %197 : vector<8x1xf32>
    %200 = arith.addf %194, %199 : vector<8x1xf32>
    %c0_73 = arith.constant 0 : index
    %c0_74 = arith.constant 0 : index
    %201 = vector.load %arg8[%c0_73, %c0_74] : memref<8x1024xf32, #tpu.memory_space<vmem>>, vector<8x1024xf32>
    tpu.vector_store %arg8[%c0_73, %c0_74], %48 {strides = array<i32>} : memref<8x1024xf32, #tpu.memory_space<vmem>>, vector<8x1024xf32>,
    %c0_75 = arith.constant 0 : index
    %c0_76 = arith.constant 0 : index
    %202 = vector.load %arg9[%c0_75, %c0_76] : memref<8x8xf32, #tpu.memory_space<vmem>>, vector<8x1xf32>
    tpu.vector_store %arg9[%c0_75, %c0_76], %194 {strides = array<i32>} : memref<8x8xf32, #tpu.memory_space<vmem>>, vector<8x1xf32>,
    %c0_77 = arith.constant 0 : index
    %c1 = arith.constant 1 : index
    %203 = vector.load %arg9[%c0_77, %c1] : memref<8x8xf32, #tpu.memory_space<vmem>>, vector<8x1xf32>
    tpu.vector_store %arg9[%c0_77, %c1], %22 {strides = array<i32>} : memref<8x8xf32, #tpu.memory_space<vmem>>, vector<8x1xf32>,
    %c0_78 = arith.constant 0 : index
    %c2 = arith.constant 2 : index
    %204 = vector.load %arg9[%c0_78, %c2] : memref<8x8xf32, #tpu.memory_space<vmem>>, vector<8x1xf32>
    tpu.vector_store %arg9[%c0_78, %c2], %29 {strides = array<i32>} : memref<8x8xf32, #tpu.memory_space<vmem>>, vector<8x1xf32>,
    %c0_79 = arith.constant 0 : index
    %c3 = arith.constant 3 : index
    %205 = vector.load %arg9[%c0_79, %c3] : memref<8x8xf32, #tpu.memory_space<vmem>>, vector<8x1xf32>
    tpu.vector_store %arg9[%c0_79, %c3], %196 {strides = array<i32>} : memref<8x8xf32, #tpu.memory_space<vmem>>, vector<8x1xf32>,
    %c0_80 = arith.constant 0 : index
    %c4 = arith.constant 4 : index
    %206 = vector.load %arg9[%c0_80, %c4] : memref<8x8xf32, #tpu.memory_space<vmem>>, vector<8x1xf32>
    tpu.vector_store %arg9[%c0_80, %c4], %200 {strides = array<i32>} : memref<8x8xf32, #tpu.memory_space<vmem>>, vector<8x1xf32>,
    %cst_81 = arith.constant 0.000000e+00 : f32
    %207 = vector.broadcast %cst_81 : f32 to vector<8x3xf32>
    %c0_82 = arith.constant 0 : index
    %c5 = arith.constant 5 : index
    %208 = vector.load %arg9[%c0_82, %c5] : memref<8x8xf32, #tpu.memory_space<vmem>>, vector<8x3xf32>
    tpu.vector_store %arg9[%c0_82, %c5], %207 {strides = array<i32>} : memref<8x8xf32, #tpu.memory_space<vmem>>, vector<8x3xf32>,
    return
  }
  func.func @transform_0(%arg0: i32) -> (i32, i32) {
    %c0_i32 = arith.constant 0 : i32
    %c0_i32_0 = arith.constant 0 : i32
    %c0_i32_1 = arith.constant 0 : i32
    return %c0_i32, %c0_i32_0 : i32, i32
  }
  func.func @transform_1(%arg0: i32) -> (i32, i32) {
    %c0_i32 = arith.constant 0 : i32
    %c0_i32_0 = arith.constant 0 : i32
    return %arg0, %c0_i32 : i32, i32
  }
  func.func @transform_2(%arg0: i32) -> (i32, i32) {
    %c0_i32 = arith.constant 0 : i32
    %c0_i32_0 = arith.constant 0 : i32
    return %arg0, %c0_i32 : i32, i32
  }
  func.func @transform_3(%arg0: i32) -> (i32, i32) {
    %c0_i32 = arith.constant 0 : i32
    %c0_i32_0 = arith.constant 0 : i32
    %c0_i32_1 = arith.constant 0 : i32
    return %c0_i32, %c0_i32_0 : i32, i32
  }
  func.func @transform_4(%arg0: i32) -> (i32, i32) {
    %c0_i32 = arith.constant 0 : i32
    %c0_i32_0 = arith.constant 0 : i32
    %c0_i32_1 = arith.constant 0 : i32
    return %c0_i32, %c0_i32_0 : i32, i32
  }
  func.func @transform_5(%arg0: i32) -> (i32, i32) {
    %c0_i32 = arith.constant 0 : i32
    %c0_i32_0 = arith.constant 0 : i32
    %c0_i32_1 = arith.constant 0 : i32
    return %c0_i32, %c0_i32_0 : i32, i32
  }
  func.func @transform_6(%arg0: i32) -> (i32, i32) {
    %c0_i32 = arith.constant 0 : i32
    %c0_i32_0 = arith.constant 0 : i32
    %c0_i32_1 = arith.constant 0 : i32
    return %c0_i32, %c0_i32_0 : i32, i32
  }
  func.func @transform_7(%arg0: i32) -> (i32, i32) {
    %c0_i32 = arith.constant 0 : i32
    %c0_i32_0 = arith.constant 0 : i32
    return %arg0, %c0_i32 : i32, i32
  }
  func.func @transform_8(%arg0: i32) -> (i32, i32) {
    %c0_i32 = arith.constant 0 : i32
    %c0_i32_0 = arith.constant 0 : i32
    return %arg0, %c0_i32 : i32, i32
  }
}

</mosaic_0001>

<bundles_post_ra>
// kernel: tpu_custom_call.1
= control target key start
LH: loop header
LB: loop body
LE: loop exit
PB: predicated region body
PF: predicated region fallthrough
CT: control target
= control target key end

     0   :  { %s4285_s0 = inlined_call_operand.<no memory space> [shape: f32[1,1], index: 0, kind: input, shape index: {}]   ;;  %s4286_s1 = inlined_call_operand.vmem [shape: f32[16,1024], index: 1, kind: input, shape index: {}]   ;;  %s4287_s2 = inlined_call_operand.vmem [shape: f32[16,32], index: 2, kind: input, shape index: {}]   ;;  %s4288_s3 = inlined_call_operand.vmem [shape: f32[1024,64], index: 3, kind: input, shape index: {}]   ;;  %s4289_s4 = inlined_call_operand.vmem [shape: f32[1,64], index: 4, kind: input, shape index: {}]   ;;  %s4290_s5 = inlined_call_operand.vmem [shape: f32[32,1024], index: 5, kind: input, shape index: {}]   ;;  %s4291_s6 = inlined_call_operand.vmem [shape: f32[1,1024], index: 6, kind: input, shape index: {}]   ;;  %s4292_s7 = inlined_call_operand.hbm [shape: f32[16,1024], index: 7, kind: output, shape index: {0}]   ;;  %s4293_s8 = inlined_call_operand.vmem [shape: f32[16,8], index: 8, kind: output, shape index: {1}]  }
   0x1   :  { %4323 = sst [smem:[#allocation55_spill]] %s4286_s1 }
   0x2   :  { %14 = sst [smem:[#allocation2]] %s4285_s0 }
   0x3   :  { %15 = vsyncpa [#allocation4], 0 }
   0x4   :  { %17 = vsyncpa [#allocation4 + $0x1], 0  ;;  %s2843_s29 = smov 0   ;;  %s2845_s30 = smov 0  }
   0x5   :  { %s2847_s9 = smov 0   ;;  %s2849_s10 = smov 0  }
   0x6 LB: > { %s2864_s0 = sadd.s32 4294967295, %s2789_s10   ;;  %s2194_s11 = sadd.s32 4294967294, %s2789_s10   ;;  %s2789_s10 = sphi %s2849_s10, %s4429_s10   ;;  %s2785_s9 = sphi %s2847_s9, %s4428_s9   ;;  %s2781_s30 = sphi %s2845_s30, %s4427_s30   ;;  %s2777_s29 = sphi %s2843_s29, %s4426_s29  }
   0x7   : > { %s2868_s12 = sadd.s32 1, %s2789_s10   ;;  %s187_s13 = sadd.s32 1, %s2785_s9 }
   0x8   : > { %s184_s14 = ssub.s32 %s2789_s10, %s2868_s12  ;;  %p197_p0 = scmp.ne.s32.totalorder %s2785_s9, %s2781_s30 }
   0x9   : > { %p185_p1 = scmp.eq.s32.totalorder %s184_s14, 0  ;;  %p198_p2 = scmp.eq.s32.totalorder %s2864_s0, 1 }
   0xa   : > { %p203_p3 = scmp.ne.s32.totalorder %s2781_s30, %s2777_s29  ;;  %p204_p4 = scmp.eq.s32.totalorder %s2194_s11, 1 }
   0xb   : > { %s2879_s15 = scalar_select %p185_p1, %s2785_s9, %s187_s13  }
   0xc   : > { %p2881_p5 = por %p198_p2, %p197_p0  ;;  %p2885_p6 = por %p204_p4, %p203_p3 }
   0xd   : > { %p2197_p7 = scmp.ge.s32.totalorder %s2789_s10, 1  ;;  %p278_p8 = scmp.lt.s32.totalorder %s2789_s10, 3 }
   0xf   : > { %p279_p9 = pnand %p2197_p7, %p278_p8 }
  0x11   : > { %282 = sbr.rel (%p279_p9) target bundleno = 1055 (0x41f), region = 48 }
  0x18   : > { %v359_v0 = vld [vmem:[%s4288_s3 + $0x80] sm:$0xff]  ;;  %v360_v1 = vld [vmem:[%s4288_s3 + $0x88] sm:$0xff]  ;;  %v361_v11 = vld [vmem:[%s4288_s3 + $0x90] sm:$0xff]  ;;  %p320_p10 = scmp.lt.s32.totalorder %s2864_s0, 1  ;;  %s4326_s1 = sld [smem:[#allocation55_spill]]  ;;  %vm783_vm0 = vcmask 261120  }
  0x19   : > { %v343_v2 = vld [vmem:[%s4288_s3] sm:$0xff]  ;;  %v2379_v3 = vpack.c.bf16 %v360_v1, %v359_v0  ;;  %v344_v4 = vld [vmem:[%s4288_s3 + $0x8] sm:$0xff]  ;;  %v362_v13 = vld [vmem:[%s4288_s3 + $0x98] sm:$0xff]  ;;  %s311_s23 = sand.u32 1, %s2781_s30   ;;  %s2238_s26 = sshll.u32 %s2864_s0, 10 }
  0x1a   : > { %v391_v5 = vld [vmem:[%s4288_s3 + $0x180] sm:$0xff]  ;;  %v392_v6 = vld [vmem:[%s4288_s3 + $0x188] sm:$0xff]  ;;  %v2381_v7 = vpack.c.bf16 %v344_v4, %v343_v2  ;;  %v345_v14 = vld [vmem:[%s4288_s3 + $0x10] sm:$0xff]  ;;  %v2383_v16 = vpack.c.bf16 %v362_v13, %v361_v11  ;;  %s2997_s13 = scalar_select %p320_p10, %s2864_s0, 1 }
  0x1b   : > { %v2411_v8 = vpack.c.bf16 %v392_v6, %v391_v5  ;;  %v375_v9 = vld [vmem:[%s4288_s3 + $0x100] sm:$0xff]  ;;  %v376_v10 = vld [vmem:[%s4288_s3 + $0x108] sm:$0xff]  ;;  %2380 = vmatprep.subr.bf16.mxu0 %v2379_v3  ;;  %v346_v15 = vld [vmem:[%s4288_s3 + $0x18] sm:$0xff]  ;;  %s2198_s25 = sshll.u32 %s311_s23, 6  ;;  %s4240_s14 = scalar_lea.hbm %s4292_s7, %s2238_s26 }
  0x1c   : > { %v2413_v12 = vpack.c.bf16 %v376_v10, %v375_v9  ;;  %2382 = vmatpush3.bf16.msra.mxu0 %v2381_v7  ;;  %v2385_v17 = vpack.c.bf16 %v346_v15, %v345_v14  ;;  %v393_v18 = vld [vmem:[%s4288_s3 + $0x190] sm:$0xff]  ;;  %v394_v19 = vld [vmem:[%s4288_s3 + $0x198] sm:$0xff]  ;;  %v363_v23 = vld [vmem:[%s4288_s3 + $0xa0] sm:$0xff]  ;;  %s2237_s24 = sshll.u32 %s2997_s13, 6  ;;  %s2201_s28 = sshll.u32 %s2997_s13, 3 }
  0x1d   : > { %2412 = vmatprep.subr.bf16.mxu1 %v2411_v8  ;;  %v377_v20 = vld [vmem:[%s4288_s3 + $0x110] sm:$0xff]  ;;  %v2415_v21 = vpack.c.bf16 %v394_v19, %v393_v18  ;;  %v378_v22 = vld [vmem:[%s4288_s3 + $0x118] sm:$0xff]  ;;  %v364_v24 = vld [vmem:[%s4288_s3 + $0xa8] sm:$0xff]  ;;  %2384 = vmatprep.subr.bf16.mxu0 %v2383_v16  ;;  %s328_s19 = scalar_lea.vmem %s4287_s2, %s2201_s28  ;;  %s2078_s20 = scalar_lea.sflag [#allocation4], %s311_s23 }
  0x1e   : > { %2414 = vmatpush3.bf16.msra.mxu1 %v2413_v12  ;;  %v2417_v25 = vpack.c.bf16 %v378_v22, %v377_v20  ;;  %v2387_v26 = vpack.c.bf16 %v364_v24, %v363_v23  ;;  %v347_v27 = vld [vmem:[%s4288_s3 + $0x20] sm:$0xff]  ;;  %v348_v28 = vld [vmem:[%s4288_s3 + $0x28] sm:$0xff]  ;;  %v365_v35 = vld [vmem:[%s4288_s3 + $0xb0] sm:$0xff]  ;;  %s3051_s27 = scalar_lea.vmem %s4326_s1, %s2237_s24  ;;  %s2791_s1 = smov 32  }
  0x1f   : > { %v395_v29 = vld [vmem:[%s4288_s3 + $0x1a0] sm:$0xff]  ;;  %2416 = vmatprep.subr.bf16.mxu1 %v2415_v21  ;;  %v396_v30 = vld [vmem:[%s4288_s3 + $0x1a8] sm:$0xff]  ;;  %v2389_v33 = vpack.c.bf16 %v348_v28, %v347_v27  ;;  %v366_v36 = vld [vmem:[%s4288_s3 + $0xb8] sm:$0xff]  ;;  %s2793_s24 = smov 96   ;;  %s2794_s22 = smov [#allocation3]  }
  0x20   : > { %v379_v31 = vld [vmem:[%s4288_s3 + $0x120] sm:$0xff]  ;;  %v380_v32 = vld [vmem:[%s4288_s3 + $0x128] sm:$0xff]  ;;  %2386 = vmatpush3.bf16.msra.mxu0 %v2385_v17  ;;  %v2419_v34 = vpack.c.bf16 %v396_v30, %v395_v29  ;;  %v349_v37 = vld [vmem:[%s4288_s3 + $0x30] sm:$0xff]  ;;  %v2391_v39 = vpack.c.bf16 %v366_v36, %v365_v35 }
  0x21   : > { %2388 = vmatprep.subr.bf16.mxu0 %v2387_v26  ;;  %v2421_v38 = vpack.c.bf16 %v380_v32, %v379_v31  ;;  %v350_v40 = vld [vmem:[%s4288_s3 + $0x38] sm:$0xff]  ;;  %v397_v41 = vld [vmem:[%s4288_s3 + $0x1b0] sm:$0xff]  ;;  %v367_v46 = vld [vmem:[%s4288_s3 + $0xc0] sm:$0xff] }
  0x22   : > { %2418 = vmatpush3.bf16.msra.mxu1 %v2417_v25  ;;  %v398_v42 = vld [vmem:[%s4288_s3 + $0x1b8] sm:$0xff]  ;;  %v381_v44 = vld [vmem:[%s4288_s3 + $0x130] sm:$0xff]  ;;  %v368_v47 = vld [vmem:[%s4288_s3 + $0xc8] sm:$0xff]  ;;  %v2393_v48 = vpack.c.bf16 %v350_v40, %v349_v37 }
  0x23   : > { %2420 = vmatprep.subr.bf16.mxu1 %v2419_v34  ;;  %v2423_v43 = vpack.c.bf16 %v398_v42, %v397_v41  ;;  %v382_v45 = vld [vmem:[%s4288_s3 + $0x138] sm:$0xff]  ;;  %v399_v49 = vld [vmem:[%s4288_s3 + $0x1c0] sm:$0xff]  ;;  %v400_v50 = vld [vmem:[%s4288_s3 + $0x1c8] sm:$0xff]  ;;  %v2395_v52 = vpack.c.bf16 %v368_v47, %v367_v46 }
  0x24   : > { %2390 = vmatpush3.bf16.msra.mxu0 %v2389_v33  ;;  %v2425_v51 = vpack.c.bf16 %v382_v45, %v381_v44  ;;  %v351_v53 = vld [vmem:[%s4288_s3 + $0x40] sm:$0xff]  ;;  %v352_v54 = vld [vmem:[%s4288_s3 + $0x48] sm:$0xff]  ;;  %v2427_v56 = vpack.c.bf16 %v400_v50, %v399_v49  ;;  %v369_v58 = vld [vmem:[%s4288_s3 + $0xd0] sm:$0xff] }
  0x25   : > { %2392 = vmatprep.subr.bf16.mxu0 %v2391_v39  ;;  %v383_v55 = vld [vmem:[%s4288_s3 + $0x140] sm:$0xff]  ;;  %v384_v57 = vld [vmem:[%s4288_s3 + $0x148] sm:$0xff]  ;;  %v370_v59 = vld [vmem:[%s4288_s3 + $0xd8] sm:$0xff]  ;;  %v2397_v62 = vpack.c.bf16 %v352_v54, %v351_v53 }
  0x26   : > { %2422 = vmatpush3.bf16.msra.mxu1 %v2421_v38  ;;  %v401_v60 = vld [vmem:[%s4288_s3 + $0x1d0] sm:$0xff]  ;;  %v402_v61 = vld [vmem:[%s4288_s3 + $0x1d8] sm:$0xff]  ;;  %v2429_v63 = vpack.c.bf16 %v384_v57, %v383_v55  ;;  %v2399_v0 = vpack.c.bf16 %v370_v59, %v369_v58  ;;  %v371_v6 = vld [vmem:[%s4288_s3 + $0xe0] sm:$0xff] }
  0x27   : > { %2424 = vmatprep.subr.bf16.mxu1 %v2423_v43  ;;  %v353_v1 = vld [vmem:[%s4288_s3 + $0x50] sm:$0xff]  ;;  %v354_v2 = vld [vmem:[%s4288_s3 + $0x58] sm:$0xff]  ;;  %v2431_v4 = vpack.c.bf16 %v402_v61, %v401_v60  ;;  %v372_v7 = vld [vmem:[%s4288_s3 + $0xe8] sm:$0xff] }
  0x28   : > { %2394 = vmatpush3.bf16.msra.mxu0 %v2393_v48  ;;  %v385_v3 = vld [vmem:[%s4288_s3 + $0x150] sm:$0xff]  ;;  %v386_v5 = vld [vmem:[%s4288_s3 + $0x158] sm:$0xff]  ;;  %v403_v8 = vld [vmem:[%s4288_s3 + $0x1e0] sm:$0xff]  ;;  %v2401_v10 = vpack.c.bf16 %v354_v2, %v353_v1  ;;  %v2403_v14 = vpack.c.bf16 %v372_v7, %v371_v6 }
  0x29   : > { %2396 = vmatprep.subr.bf16.mxu0 %v2395_v52  ;;  %v404_v9 = vld [vmem:[%s4288_s3 + $0x1e8] sm:$0xff]  ;;  %v355_v11 = vld [vmem:[%s4288_s3 + $0x60] sm:$0xff]  ;;  %v2433_v13 = vpack.c.bf16 %v386_v5, %v385_v3  ;;  %v373_v19 = vld [vmem:[%s4288_s3 + $0xf0] sm:$0xff] }
  0x2a   : > { %2426 = vmatpush3.bf16.msra.mxu1 %v2425_v51  ;;  %v356_v12 = vld [vmem:[%s4288_s3 + $0x68] sm:$0xff]  ;;  %v387_v15 = vld [vmem:[%s4288_s3 + $0x160] sm:$0xff]  ;;  %v2435_v18 = vpack.c.bf16 %v404_v9, %v403_v8  ;;  %v374_v20 = vld [vmem:[%s4288_s3 + $0xf8] sm:$0xff] }
  0x2b   : > { %2428 = vmatprep.subr.bf16.mxu1 %v2427_v56  ;;  %v388_v16 = vld [vmem:[%s4288_s3 + $0x168] sm:$0xff]  ;;  %v3082_v21 = vld [vmem:[%s3051_s27 + $0x18] sm:$0xff]  ;;  %v405_v22 = vld [vmem:[%s4288_s3 + $0x1f0] sm:$0xff]  ;;  %v2405_v24 = vpack.c.bf16 %v356_v12, %v355_v11  ;;  %v2407_v26 = vpack.c.bf16 %v374_v20, %v373_v19 }
  0x2c   : > { %2398 = vmatpush3.bf16.msra.mxu0 %v2397_v62  ;;  %v3072_v17 = vld [vmem:[%s3051_s27 + $0x8] sm:$0xff]  ;;  %v406_v23 = vld [vmem:[%s4288_s3 + $0x1f8] sm:$0xff]  ;;  %612 = vmatprep.mubr.f32.mxu1 %v3082_v21  ;;  %v2437_v25 = vpack.c.bf16 %v388_v16, %v387_v15  ;;  %v357_v27 = vld [vmem:[%s4288_s3 + $0x70] sm:$0xff] }
  0x2d   : > { %2400 = vmatprep.subr.bf16.mxu0 %v2399_v0  ;;  %542 = vmatprep.mubr.f32.mxu0 %v3072_v17  ;;  %v358_v28 = vld [vmem:[%s4288_s3 + $0x78] sm:$0xff]  ;;  %v389_v29 = vld [vmem:[%s4288_s3 + $0x170] sm:$0xff]  ;;  %v2439_v30 = vpack.c.bf16 %v406_v23, %v405_v22  ;;  %v423_v32 = vld [vmem:[%s4288_s3 + $0x280] sm:$0xff] }
  0x2e   : > { %2430 = vmatpush3.bf16.msra.mxu1 %v2429_v63  ;;  %v390_v31 = vld [vmem:[%s4288_s3 + $0x178] sm:$0xff]  ;;  %v424_v33 = vld [vmem:[%s4288_s3 + $0x288] sm:$0xff]  ;;  %v455_v34 = vld [vmem:[%s4288_s3 + $0x380] sm:$0xff]  ;;  %v2409_v36 = vpack.c.bf16 %v358_v28, %v357_v27 }
  0x2f   : > { %2432 = vmatprep.subr.bf16.mxu1 %v2431_v4  ;;  %v456_v35 = vld [vmem:[%s4288_s3 + $0x388] sm:$0xff]  ;;  %v2441_v37 = vpack.c.bf16 %v390_v31, %v389_v29  ;;  %v2443_v38 = vpack.c.bf16 %v424_v33, %v423_v32  ;;  %v407_v39 = vld [vmem:[%s4288_s3 + $0x200] sm:$0xff]  ;;  %v425_v44 = vld [vmem:[%s4288_s3 + $0x290] sm:$0xff] }
  0x30   : > { %2402 = vmatpush3.bf16.msra.mxu0 %v2401_v10  ;;  %v408_v40 = vld [vmem:[%s4288_s3 + $0x208] sm:$0xff]  ;;  %v439_v41 = vld [vmem:[%s4288_s3 + $0x300] sm:$0xff]  ;;  %v2475_v42 = vpack.c.bf16 %v456_v35, %v455_v34  ;;  %v426_v45 = vld [vmem:[%s4288_s3 + $0x298] sm:$0xff] }
  0x31   : > { %2404 = vmatprep.subr.bf16.mxu0 %v2403_v14  ;;  %v440_v43 = vld [vmem:[%s4288_s3 + $0x308] sm:$0xff]  ;;  %v457_v46 = vld [vmem:[%s4288_s3 + $0x390] sm:$0xff]  ;;  %v458_v47 = vld [vmem:[%s4288_s3 + $0x398] sm:$0xff]  ;;  %v2445_v49 = vpack.c.bf16 %v408_v40, %v407_v39  ;;  %v2447_v52 = vpack.c.bf16 %v426_v45, %v425_v44 }
  0x32   : > { %2434 = vmatpush3.bf16.msra.mxu1 %v2433_v13  ;;  %v3140_v48 = vld [vmem:[%s3051_s27] sm:$0xff]  ;;  %v3143_v50 = vld [vmem:[%s3051_s27 + $0x10] sm:$0xff]  ;;  %v2477_v51 = vpack.c.bf16 %v440_v43, %v439_v41  ;;  %v410_v54 = vld [vmem:[%s4288_s3 + $0x218] sm:$0xff]  ;;  %v2479_v56 = vpack.c.bf16 %v458_v47, %v457_v46 }
  0x33   : > { %2436 = vmatprep.subr.bf16.mxu1 %v2435_v18  ;;  %v409_v53 = vld [vmem:[%s4288_s3 + $0x210] sm:$0xff]  ;;  %v442_v57 = vld [vmem:[%s4288_s3 + $0x318] sm:$0xff]  ;;  %v427_v58 = vld [vmem:[%s4288_s3 + $0x2a0] sm:$0xff] }
  0x34   : > { %2406 = vmatpush3.bf16.msra.mxu0 %v2405_v24  ;;  %v441_v55 = vld [vmem:[%s4288_s3 + $0x310] sm:$0xff]  ;;  %v428_v59 = vld [vmem:[%s4288_s3 + $0x2a8] sm:$0xff]  ;;  %v459_v60 = vld [vmem:[%s4288_s3 + $0x3a0] sm:$0xff]  ;;  %v2449_v62 = vpack.c.bf16 %v410_v54, %v409_v53 }
  0x35   : > { %2408 = vmatprep.subr.bf16.mxu0 %v2407_v26  ;;  %v460_v61 = vld [vmem:[%s4288_s3 + $0x3a8] sm:$0xff]  ;;  %v2481_v63 = vpack.c.bf16 %v442_v57, %v441_v55  ;;  %v2451_v0 = vpack.c.bf16 %v428_v59, %v427_v58  ;;  %v411_v1 = vld [vmem:[%s4288_s3 + $0x220] sm:$0xff]  ;;  %v429_v6 = vld [vmem:[%s4288_s3 + $0x2b0] sm:$0xff] }
  0x36   : > { %2438 = vmatpush3.bf16.msra.mxu1 %v2437_v25  ;;  %v412_v2 = vld [vmem:[%s4288_s3 + $0x228] sm:$0xff]  ;;  %v443_v3 = vld [vmem:[%s4288_s3 + $0x320] sm:$0xff]  ;;  %v2483_v4 = vpack.c.bf16 %v460_v61, %v459_v60  ;;  %v430_v7 = vld [vmem:[%s4288_s3 + $0x2b8] sm:$0xff] }
  0x37   : > { %2440 = vmatprep.subr.bf16.mxu1 %v2439_v30  ;;  %v444_v5 = vld [vmem:[%s4288_s3 + $0x328] sm:$0xff]  ;;  %v461_v8 = vld [vmem:[%s4288_s3 + $0x3b0] sm:$0xff]  ;;  %v462_v9 = vld [vmem:[%s4288_s3 + $0x3b8] sm:$0xff]  ;;  %v2453_v10 = vpack.c.bf16 %v412_v2, %v411_v1  ;;  %v2455_v12 = vpack.c.bf16 %v430_v7, %v429_v6 }
  0x38   : > { %2410 = vmatpush3.bf16.msra.mxu0 %v2409_v36  ;;  %v2485_v11 = vpack.c.bf16 %v444_v5, %v443_v3  ;;  %v413_v13 = vld [vmem:[%s4288_s3 + $0x230] sm:$0xff]  ;;  %v414_v14 = vld [vmem:[%s4288_s3 + $0x238] sm:$0xff]  ;;  %v2487_v16 = vpack.c.bf16 %v462_v9, %v461_v8  ;;  %v431_v19 = vld [vmem:[%s4288_s3 + $0x2c0] sm:$0xff] }
  0x39   : > { %2444 = vmatprep.subr.bf16.mxu0 %v2443_v38  ;;  %v445_v15 = vld [vmem:[%s4288_s3 + $0x330] sm:$0xff]  ;;  %v446_v18 = vld [vmem:[%s4288_s3 + $0x338] sm:$0xff]  ;;  %v432_v20 = vld [vmem:[%s4288_s3 + $0x2c8] sm:$0xff]  ;;  %v2457_v24 = vpack.c.bf16 %v414_v14, %v413_v13 }
  0x3a   : > { %2442 = vmatpush3.bf16.msra.mxu1 %v2441_v37  ;;  %v463_v22 = vld [vmem:[%s4288_s3 + $0x3c0] sm:$0xff]  ;;  %v464_v23 = vld [vmem:[%s4288_s3 + $0x3c8] sm:$0xff]  ;;  %v3232_v27 = vld [vmem:[%s3051_s27 + $0x38] sm:$0xff]  ;;  %v2489_v28 = vpack.c.bf16 %v446_v18, %v445_v15  ;;  %v2459_v29 = vpack.c.bf16 %v432_v20, %v431_v19 }
  0x3b   : > { %2476 = vmatprep.subr.bf16.mxu1 %v2475_v42  ;;  %543 = vmatmul.mubr.f32.vlgmr.msra.gmra.mrb[0].mxu0 %v3140_v48  ;;  %v415_v25 = vld [vmem:[%s4288_s3 + $0x240] sm:$0xff]  ;;  %v3229_v26 = vld [vmem:[%s3051_s27 + $0x28] sm:$0xff]  ;;  %v2491_v33 = vpack.c.bf16 %v464_v23, %v463_v22  ;;  %v433_v35 = vld [vmem:[%s4288_s3 + $0x2d0] sm:$0xff] }
  0x3c   : > { %2446 = vmatpush3.bf16.msra.mxu0 %v2445_v49  ;;  %v416_v30 = vld [vmem:[%s4288_s3 + $0x248] sm:$0xff]  ;;  %v447_v31 = vld [vmem:[%s4288_s3 + $0x340] sm:$0xff]  ;;  %v434_v36 = vld [vmem:[%s4288_s3 + $0x2d8] sm:$0xff]  ;;  %682 = vmatprep.mubr.f32.mxu0 %v3229_v26 }
  0x3d   : > { %613 = vmatmul.mubr.f32.vlgmr.msra.gmra.mrb[0].mxu1 %v3143_v50  ;;  %2448 = vmatprep.subr.bf16.mxu0 %v2447_v52  ;;  %v341_v32 = vld [vmem:[%s328_s19] sm:$0xff]  ;;  %v448_v34 = vld [vmem:[%s4288_s3 + $0x348] sm:$0xff]  ;;  %v465_v38 = vld [vmem:[%s4288_s3 + $0x3d0] sm:$0xff]  ;;  %v2461_v40 = vpack.c.bf16 %v416_v30, %v415_v25  ;;  %v2463_v42 = vpack.c.bf16 %v434_v36, %v433_v35  ;;  %s3544_s19 = scalar_lea.vmem [#allocation3], %s2198_s25 }
  0x3e   : > { %2478 = vmatpush3.bf16.msra.mxu1 %v2477_v51  ;;  %v772_v37 = vmul.f32 %v341_v32, %v341_v32  ;;  %v466_v39 = vld [vmem:[%s4288_s3 + $0x3d8] sm:$0xff]  ;;  %752 = vmatprep.mubr.f32.mxu1 %v3232_v27  ;;  %v2493_v41 = vpack.c.bf16 %v448_v34, %v447_v31  ;;  %v417_v43 = vld [vmem:[%s4288_s3 + $0x250] sm:$0xff]  ;;  %v435_v49 = vld [vmem:[%s4288_s3 + $0x2e0] sm:$0xff]  ;;  %s2096_s18 = sshll.u32 %s3544_s19, 4  ;;  %s2097_s18 = int_to_ptr.vmem [resolvable:$true] %s2096_s18 }
  0x3f   : > { %2480 = vmatprep.subr.bf16.mxu1 %v2479_v56  ;;  %762 = vrot.lane.b32.xlu0 %v341_v32, %s2791_s1  ;;  %v418_v44 = vld [vmem:[%s4288_s3 + $0x258] sm:$0xff]  ;;  %v449_v45 = vld [vmem:[%s4288_s3 + $0x350] sm:$0xff]  ;;  %v2495_v46 = vpack.c.bf16 %v466_v39, %v465_v38  ;;  %v436_v51 = vld [vmem:[%s4288_s3 + $0x2e8] sm:$0xff]  ;;  %s2727_s21 = scalar_lea.vmem %s2097_s18, 1024 }
  0x40   : > { %2450 = vmatpush3.bf16.msra.mxu0 %v2449_v62  ;;  %774 = vrot.lane.b32.xlu1 %v772_v37, %s2791_s1  ;;  %v450_v47 = vld [vmem:[%s4288_s3 + $0x358] sm:$0xff]  ;;  %v467_v52 = vld [vmem:[%s4288_s3 + $0x3e0] sm:$0xff]  ;;  %v468_v53 = vld [vmem:[%s4288_s3 + $0x3e8] sm:$0xff]  ;;  %v2465_v54 = vpack.c.bf16 %v418_v44, %v417_v43  ;;  %v2467_v56 = vpack.c.bf16 %v436_v51, %v435_v49  ;;  %p2728_p11 = scmp.ne.s32.totalorder %s2097_s18, %s2727_s21 }
  0x41   : > { %2452 = vmatprep.subr.bf16.mxu0 %v2451_v0  ;;  %v2497_v55 = vpack.c.bf16 %v450_v47, %v449_v45  ;;  %v419_v57 = vld [vmem:[%s4288_s3 + $0x260] sm:$0xff]  ;;  %v420_v58 = vld [vmem:[%s4288_s3 + $0x268] sm:$0xff]  ;;  %v2499_v60 = vpack.c.bf16 %v468_v53, %v467_v52  ;;  %v437_v62 = vld [vmem:[%s4288_s3 + $0x2f0] sm:$0xff] }
  0x42   : > { %2482 = vmatpush3.bf16.msra.mxu1 %v2481_v63  ;;  %v451_v59 = vld [vmem:[%s4288_s3 + $0x360] sm:$0xff]  ;;  %v452_v61 = vld [vmem:[%s4288_s3 + $0x368] sm:$0xff]  ;;  %v438_v63 = vld [vmem:[%s4288_s3 + $0x2f8] sm:$0xff]  ;;  %v2469_v2 = vpack.c.bf16 %v420_v58, %v419_v57  ;;  %p2729_p12 = pnand %p2728_p11, %p2881_p5 }
  0x43   : > { %2484 = vmatprep.subr.bf16.mxu1 %v2483_v4  ;;  %v469_v0 = vld [vmem:[%s4288_s3 + $0x3f0] sm:$0xff]  ;;  %v470_v1 = vld [vmem:[%s4288_s3 + $0x3f8] sm:$0xff]  ;;  %v2501_v3 = vpack.c.bf16 %v452_v61, %v451_v59  ;;  %v2471_v4 = vpack.c.bf16 %v438_v63, %v437_v62  ;;  %v2203_v15 = vld [vmem:[%s4289_s4] ss:$0 sm:$0xff] }
  0x44   : > { %2454 = vmatpush3.bf16.msra.mxu0 %v2453_v10  ;;  %v421_v5 = vld [vmem:[%s4288_s3 + $0x270] sm:$0xff]  ;;  %v422_v6 = vld [vmem:[%s4288_s3 + $0x278] sm:$0xff]  ;;  %v2503_v7 = vpack.c.bf16 %v470_v1, %v469_v0  ;;  %v794_v32 = vld [vmem:[%s4290_s5 + $0x8] sm:$0xff]  ;;  %p2730_p13 = pneg %p2729_p12 }
  0x45   : > { %2456 = vmatprep.subr.bf16.mxu0 %v2455_v12  ;;  %v453_v8 = vld [vmem:[%s4288_s3 + $0x370] sm:$0xff]  ;;  %v454_v9 = vld [vmem:[%s4288_s3 + $0x378] sm:$0xff]  ;;  %v2473_v10 = vpack.c.bf16 %v422_v6, %v421_v5  ;;  %v3318_v12 = vld [vmem:[%s3051_s27 + $0x20] sm:$0xff] }
  0x46   : > { %2486 = vmatpush3.bf16.msra.mxu1 %v2485_v11  ;;  %v2505_v11 = vpack.c.bf16 %v454_v9, %v453_v8  ;;  %v3321_v13 = vld [vmem:[%s3051_s27 + $0x30] sm:$0xff]  ;;  %v796_v34 = vld [vmem:[%s4290_s5 + $0x18] sm:$0xff]  ;;  %v793_v38 = vld [vmem:[%s4290_s5] sm:$0xff]  ;;  %v4294_v9 = vmov 0.0   ;;  %s2731_s27 = sshll.u32 %s2794_s22, 4  ;;  %s2732_s27 = int_to_ptr.vmem [resolvable:$false] %s2731_s27 }
  0x47   : > { %2488 = vmatprep.subr.bf16.mxu1 %v2487_v16  ;;  %v804_v37 = vld [vmem:[%s4290_s5 + $0x58] sm:$0xff]  ;;  %v801_v39 = vld [vmem:[%s4290_s5 + $0x40] sm:$0xff]  ;;  %v795_v43 = vld [vmem:[%s4290_s5 + $0x10] sm:$0xff]  ;;  %p2734_p0 = scmp.lt.s32.totalorder %s2097_s18, %s2732_s27 }
  0x48   : > { %2458 = vmatpush3.bf16.msra.mxu0 %v2457_v24  ;;  %v803_v44 = vld [vmem:[%s4290_s5 + $0x50] sm:$0xff]  ;;  %v810_v45 = vld [vmem:[%s4290_s5 + $0x88] sm:$0xff]  ;;  %v812_v49 = vld [vmem:[%s4290_s5 + $0x98] sm:$0xff] }
  0x49   : > { %2460 = vmatprep.subr.bf16.mxu0 %v2459_v29  ;;  %v818_v47 = vld [vmem:[%s4290_s5 + $0xc8] sm:$0xff]  ;;  %v820_v51 = vld [vmem:[%s4290_s5 + $0xd8] sm:$0xff]  ;;  %v811_v57 = vld [vmem:[%s4290_s5 + $0x90] sm:$0xff] }
  0x4a   : > { %2490 = vmatpush3.bf16.msra.mxu1 %v2489_v28  ;;  %v2511_v53 = vpack.c.bf16 %v818_v47, %v810_v45  ;;  %v808_v6 = vld [vmem:[%s4290_s5 + $0x78] sm:$0xff]  ;;  %v827_v45 = vlaneseq }
  0x4b   : > { %2492 = vmatprep.subr.bf16.mxu1 %v2491_v33  ;;  %v802_v33 = vld [vmem:[%s4290_s5 + $0x48] sm:$0xff] }
  0x4c   : > { %2462 = vmatpush3.bf16.msra.mxu0 %v2461_v40  ;;  %v2507_v36 = vpack.c.bf16 %v802_v33, %v794_v32  ;;  %v813_v32 = vld [vmem:[%s4290_s5 + $0xa0] sm:$0xff] }
  0x4d   : > { %2464 = vmatprep.subr.bf16.mxu0 %v2463_v42  ;;  %v2509_v42 = vpack.c.bf16 %v801_v39, %v793_v38  ;;  %v823_v38 = vld [vmem:[%s4290_s5 + $0xf0] sm:$0xff] }
  0x4e   : > { %2494 = vmatpush3.bf16.msra.mxu1 %v2493_v41  ;;  %v2515_v41 = vpack.c.bf16 %v804_v37, %v796_v34  ;;  %v815_v37 = vld [vmem:[%s4290_s5 + $0xb0] sm:$0xff] }
  0x4f   : > { %2496 = vmatprep.subr.bf16.mxu1 %v2495_v46  ;;  %v2517_v46 = vpack.c.bf16 %v803_v44, %v795_v43 }
  0x50   : > { %2466 = vmatpush3.bf16.msra.mxu0 %v2465_v54  ;;  %v2519_v54 = vpack.c.bf16 %v820_v51, %v812_v49  ;;  %v1995_v51 = vsub.f32 1.0, %v3072_v17 }
  0x51   : > { %2468 = vmatprep.subr.bf16.mxu0 %v2467_v56  ;;  %v817_v56 = vld [vmem:[%s4290_s5 + $0xc0] sm:$0xff] }
  0x52   : > { %2498 = vmatpush3.bf16.msra.mxu1 %v2497_v55  ;;  %v809_v55 = vld [vmem:[%s4290_s5 + $0x80] sm:$0xff] }
  0x53   : > { %2500 = vmatprep.subr.bf16.mxu1 %v2499_v60  ;;  %v2513_v59 = vpack.c.bf16 %v817_v56, %v809_v55  ;;  %v819_v60 = vld [vmem:[%s4290_s5 + $0xd0] sm:$0xff]  ;;  %v1994_v55 = vsub.f32 1.0, %v3140_v48 }
  0x54   : > { %2470 = vmatpush3.bf16.msra.mxu0 %v2469_v2  ;;  %v2521_v63 = vpack.c.bf16 %v819_v60, %v811_v57  ;;  %v798_v2 = vld [vmem:[%s4290_s5 + $0x28] sm:$0xff]  ;;  %v1997_v60 = vsub.f32 1.0, %v3082_v21 }
  0x55   : > { %2472 = vmatprep.subr.bf16.mxu0 %v2471_v4  ;;  %v800_v4 = vld [vmem:[%s4290_s5 + $0x38] sm:$0xff] }
  0x56   : > { %2502 = vmatpush3.bf16.msra.mxu1 %v2501_v3  ;;  %v806_v3 = vld [vmem:[%s4290_s5 + $0x68] sm:$0xff]  ;;  %v2531_v8 = vpack.c.bf16 %v808_v6, %v800_v4 }
  0x57   : > { %2504 = vmatprep.subr.bf16.mxu1 %v2503_v7  ;;  %v2523_v5 = vpack.c.bf16 %v806_v3, %v798_v2 }
  0x58   : > { %2474 = vmatpush3.bf16.msra.mxu0 %v2473_v10 }
  0x59   : > { %2508 = vmatprep.subr.bf16.mxu0 %v2507_v36  ;;  %v821_v36 = vld [vmem:[%s4290_s5 + $0xe0] sm:$0xff] }
  0x5a   : > { %2506 = vmatpush3.bf16.msra.mxu1 %v2505_v11 }
  0x5b   : > { %683 = vmatmul.mubr.f32.vlgmr.msra.gmra.mrb[2].mxu0 %v3318_v12  ;;  %2516 = vmatprep.subr.bf16.mxu1 %v2515_v41  ;;  %v2537_v41 = vpack.c.bf16 %v823_v38, %v815_v37  ;;  %v1999_v37 = vsub.f32 1.0, %v3229_v26 }
  0x5c   : > { %2510 = vmatpush1.bf16.msra.mxu0 %v2509_v42  ;;  %934 = vmatprep.mubr.f32.mxu0 %v4294_v9 }
  0x5d   : > { %753 = vmatmul.mubr.f32.vlgmr.msra.gmra.mrb[2].mxu1 %v3321_v13  ;;  %2512 = vmatprep.subr.bf16.mxu0 %v2511_v53 }
  0x5e   : > { %2518 = vmatpush1.bf16.msra.mxu1 %v2517_v46  ;;  %1005 = vmatprep.mubr.f32.mxu1 %v4294_v9  ;;  %v828_v46 = vshrl.u32 %v827_v45, 7 }
  0x5f   : > { %2520 = vmatprep.subr.bf16.mxu1 %v2519_v54 }
  0x60   : > { %2514 = vmatpush1.bf16.msra.mxu0 %v2513_v59  ;;  %v829_v47 = vsub.s32 0, %v828_v46  ;;  %v837_v49 = vsub.s32 2, %v828_v46  ;;  %v833_v53 = vsub.s32 1, %v828_v46  ;;  %v841_v54 = vsub.s32 3, %v828_v46 }
  0x61   : > { %2524 = vmatprep.subr.bf16.mxu0 %v2523_v5  ;;  %v845_v3 = vsub.s32 4, %v828_v46  ;;  %v849_v5 = vsub.s32 5, %v828_v46  ;;  %v857_v6 = vsub.s32 7, %v828_v46 }
  0x62   : > { %2522 = vmatpush1.bf16.msra.mxu1 %v2521_v63 }
  0x63   : > { %2532 = vmatprep.subr.bf16.mxu1 %v2531_v8 }
  0xb1   : > { %v763_v10 = vpop.permute.xlu0 %762 }
  0xb2   : > { %v775_v58 = vpop.permute.xlu1 %774 }
 0x10e   : > { %v2271_v14 = vpop.f32.mrb[0].mxu0 }
 0x10f   : > { %v2272_v16 = vpop.f32.mrb[1].mxu0 }
 0x110   : > { %v2306_v18 = vpop.f32.mrb[0].mxu1  ;;  %v2273_v19 = vadd.f32 %v2272_v16, %v2271_v14 }
 0x111   : > { %v2307_v20 = vpop.f32.mrb[1].mxu1 }
 0x112   : > { %v2308_v22 = vadd.f32 %v2307_v20, %v2306_v18  ;;  %v545_v23 = vadd.f32 %v2273_v19, %v2203_v15  ;;  %v797_v18 = vld [vmem:[%s4290_s5 + $0x20] sm:$0xff]  ;;  %v799_v20 = vld [vmem:[%s4290_s5 + $0x30] sm:$0xff] }
 0x113   : > { %v805_v19 = vld [vmem:[%s4290_s5 + $0x60] sm:$0xff] }
 0x114   : > { %v615_v24 = vadd.f32 %v2308_v22, %v545_v23  ;;  %v807_v22 = vld [vmem:[%s4290_s5 + $0x70] sm:$0xff]  ;;  %v814_v23 = vld [vmem:[%s4290_s5 + $0xa8] sm:$0xff] }
 0x12e   : > { %v2341_v25 = vpop.f32.mrb[2].mxu0 }
 0x12f   : > { %v2342_v28 = vpop.f32.mrb[3].mxu0 }
 0x130   : > { %v2376_v29 = vpop.f32.mrb[2].mxu1  ;;  %v2343_v30 = vadd.f32 %v2342_v28, %v2341_v25  ;;  %v816_v25 = vld [vmem:[%s4290_s5 + $0xb8] sm:$0xff] }
 0x131   : > { %v2377_v31 = vpop.f32.mrb[3].mxu1  ;;  %v824_v28 = vld [vmem:[%s4290_s5 + $0xf8] sm:$0xff] }
 0x132   : > { %v2378_v35 = vadd.f32 %v2377_v31, %v2376_v29  ;;  %v685_v40 = vadd.f32 %v2343_v30, %v615_v24  ;;  %v822_v24 = vld [vmem:[%s4290_s5 + $0xe8] sm:$0xff]  ;;  %v2525_v30 = vpack.c.bf16 %v805_v19, %v797_v18  ;;  %v2533_v31 = vpack.c.bf16 %v807_v22, %v799_v20 }
 0x133   : > { %v2527_v34 = vpack.c.bf16 %v822_v24, %v814_v23 }
 0x134   : > { %v755_v52 = vadd.f32 %v2378_v35, %v685_v40  ;;  %v2535_v35 = vpack.c.bf16 %v824_v28, %v816_v25  ;;  %v2529_v40 = vpack.c.bf16 %v821_v36, %v813_v32  ;;  %v1996_v25 = vsub.f32 1.0, %v3143_v50 }
 0x136   : > { %v758_v61 = vmul.f32 0.5, %v755_v52  ;;  %v771_v62 = vadd.f32 1.837877, %v755_v52 }
 0x138   : > { %v759_v0 = vmul.f32 1.442695, %v758_v61  ;;  %v777_v1 = vadd.f32 %v775_v58, %v771_v62 }
 0x13a   : > { %2581 = vpow2.f32 %v759_v0  ;;  %v778_v7 = vmul.f32 -0.5, %v777_v1 }
 0x13b   : > { %2583 = vlog2.f32 %v3072_v17  ;;  %v853_v17 = vsub.s32 6, %v828_v46 }
 0x13c   : > { %780 = vrot.lane.b32.xlu1 %v778_v7, %s2793_s24  ;;  %2585 = vlog2.f32 %v3140_v48 }
 0x13d   : > { %2587 = vlog2.f32 %v1995_v51  ;;  %v1998_v51 = vsub.f32 1.0, %v3318_v12 }
 0x13e   : > { %2589 = vlog2.f32 %v1994_v55 }
 0x13f   : > { %2591 = vlog2.f32 %v3082_v21 }
 0x140   : > { %2593 = vlog2.f32 %v1997_v60 }
 0x141   : > { %2595 = vlog2.f32 %v3143_v50 }
 0x144   : > { %v2582_v11 = vpop.eup %2581 }
 0x145   : > { %v765_v14 = vmul.f32 %v2582_v11, %v763_v10  ;;  %v3444_v18 = vpop.eup %2583 }
 0x146   : > { %v3446_v24 = vpop.eup %2585 }
 0x147   : > { %767 = vrot.lane.b32.xlu0 %v765_v14, %s2793_s24  ;;  %v3449_v28 = vpop.eup %2587  ;;  %s2733_s24 = scalar_lea.vmem %s2732_s27, 2048 }
 0x148   : > { %p2735_p1 = scmp.lt.s32.totalorder %s2733_s24, %s2727_s21 }
 0x14a   : > { %p2736_p2 = por %p2735_p1, %p2734_p0 }
 0x14c   : > { %p2737_p3 = pnand %p2736_p2, %p2730_p13 }
 0x1ae   : > { %v781_v15 = vpop.permute.xlu1 %780 }
 0x1af   : > { %v784_v16 = vsel %vm783_vm0, %v781_v15, 0.0 }
 0x1b0   : > { %785 = vadd.xlane.f32.xlu0 %v784_v16 }
 0x1b9   : > { %v768_v29 = vpop.permute.xlu0 %767 }
 0x1ba   : > { %v770_v33 = vadd.f32 %v768_v29, %v755_v52  ;;  %v825_v52 = vld [vmem:[%s4291_s6] sm:$0xff] }
 0x1bb   : > { %v830_v56 = vrot.slane %v825_v52, %v829_v47  ;;  %v838_v57 = vrot.slane %v825_v52, %v837_v49  ;;  %v834_v58 = vrot.slane %v825_v52, %v833_v53  ;;  %v842_v59 = vrot.slane %v825_v52, %v841_v54 }
 0x1bc   : > { %2204 = vmatmul.mubr.msk.f32.vlgmr.msra.gmra.mrb[4].mxu0 %vm783_vm0, %v770_v33  ;;  %2205 = vmatmul.mubr.msk.f32.vlgmr.msra.gmra.mrb[4].mxu1 %vm783_vm0, %v770_v33  ;;  %v787_v39 = vmul.f32 %v770_v33, %v770_v33  ;;  %v846_v15 = vrot.slane %v825_v52, %v845_v3  ;;  %v854_v16 = vrot.slane %v825_v52, %v853_v17 }
 0x1bd   : > { %2526 = vmatpush1.bf16.msra.mxu0 %v2525_v30  ;;  %2534 = vmatpush1.bf16.msra.mxu1 %v2533_v31  ;;  %v850_v22 = vrot.slane %v825_v52, %v849_v5  ;;  %v858_v23 = vrot.slane %v825_v52, %v857_v6  ;;  %v3451_v31 = vpop.eup %2589 }
 0x1be   : > { %2528 = vmatprep.subr.bf16.mxu0 %v2527_v34  ;;  %2536 = vmatprep.subr.bf16.mxu1 %v2535_v35  ;;  %v788_v42 = vadd.f32 1.837877, %v787_v39  ;;  %v3453_v36 = vpop.eup %2591 }
 0x1bf   : > { %1076 = vmatprep.mubr.f32.mxu0 %v4294_v9  ;;  %1147 = vmatprep.mubr.f32.mxu1 %v4294_v9 }
 0x1c0   : > { %v789_v43 = vmul.f32 -0.5, %v788_v42 }
 0x1c1   : > { %2530 = vmatpush1.bf16.msra.mxu0 %v2529_v40  ;;  %2538 = vmatpush1.bf16.msra.mxu1 %v2537_v41 }
 0x1c2   : > { %v790_v44 = vsel %vm783_vm0, %v789_v43, 0.0  ;;  %v2594_v43 = vpop.eup %2593 }
 0x1c3   : > { %791 = vadd.xlane.f32.xlu1 %v790_v44  ;;  %v3458_v46 = vpop.eup %2595 }
 0x1c4   : > { %2206 = vmatmul.mubr.msk.f32.vlgmr.msra.gmra.mrb[6].mxu0 %vm783_vm0, %v770_v33  ;;  %2207 = vmatmul.mubr.msk.f32.vlgmr.msra.gmra.mrb[6].mxu1 %vm783_vm0, %v770_v33 }
 0x28f   : > { %v936_v61 = vpop.f32.mrb[4].mxu0  ;;  %v1007_v62 = vpop.f32.mrb[4].mxu1 }
 0x290   : > { %v937_v63 = vadd.f32 %v936_v61, %v830_v56  ;;  %v1008_v0 = vadd.f32 %v1007_v62, %v838_v57  ;;  %v938_v1 = vpop.f32.mrb[5].mxu0  ;;  %v1009_v2 = vpop.f32.mrb[5].mxu1  ;;  %v2000_v62 = vsub.f32 1.0, %v3321_v13 }
 0x291   : > { %v939_v4 = vadd.f32 %v938_v1, %v834_v58  ;;  %v1010_v48 = vadd.f32 %v1009_v2, %v842_v59 }
 0x292   : > { %v1154_v7 = vsub.f32 0.0, %v937_v63  ;;  %v1156_v8 = vsub.f32 0.0, %v1008_v0 }
 0x293   : > { %v1155_v10 = vsub.f32 0.0, %v939_v4  ;;  %v1157_v11 = vsub.f32 0.0, %v1010_v48 }
 0x294   : > { %v1162_v21 = vmul.f32 1.442695, %v1154_v7  ;;  %v1166_v14 = vmul.f32 1.442695, %v1156_v8 }
 0x295   : > { %v1164_v19 = vmul.f32 1.442695, %v1155_v10  ;;  %v1168_v20 = vmul.f32 1.442695, %v1157_v11  ;;  %v3491_v10 = vmul.f32 0.6931472, %v3444_v18 }
 0x296   : > { %2597 = vpow2.f32 %v1162_v21  ;;  %v3494_v11 = vmul.f32 0.6931472, %v3446_v24  ;;  %v3507_v18 = vmul.f32 0.6931472, %v2594_v43 }
 0x297   : > { %2599 = vpow2.f32 %v1166_v14  ;;  %v1078_v29 = vpop.f32.mrb[6].mxu0  ;;  %v1149_v30 = vpop.f32.mrb[6].mxu1  ;;  %4327 = vst [vmem:[#allocation6_spill] sm:$0xff] %v3491_v10 }
 0x298   : > { %2601 = vpow2.f32 %v1164_v19  ;;  %v1079_v32 = vadd.f32 %v1078_v29, %v846_v15  ;;  %v1150_v33 = vadd.f32 %v1149_v30, %v854_v16  ;;  %v1080_v34 = vpop.f32.mrb[7].mxu0  ;;  %v1151_v35 = vpop.f32.mrb[7].mxu1  ;;  %4328 = vst [vmem:[#allocation7_spill] sm:$0xff] %v3494_v11  ;;  %v3498_v15 = vmul.f32 0.6931472, %v3449_v28  ;;  %4332 = vst [vmem:[#allocation11_spill] sm:$0xff] %v3507_v18 }
 0x299   : > { %2603 = vpow2.f32 %v1168_v20  ;;  %v1081_v38 = vadd.f32 %v1080_v34, %v850_v22  ;;  %v1152_v50 = vadd.f32 %v1151_v35, %v858_v23  ;;  %v3501_v16 = vmul.f32 0.6931472, %v3451_v31 }
 0x29a   : > { %2605 = vlog2.f32 %v1996_v25  ;;  %v1158_v39 = vsub.f32 0.0, %v1079_v32  ;;  %v1160_v40 = vsub.f32 0.0, %v1150_v33  ;;  %4329 = vst [vmem:[#allocation8_spill] sm:$0xff] %v3498_v15  ;;  %v3505_v23 = vmul.f32 0.6931472, %v3453_v36 }
 0x29b   : > { %2607 = vlog2.f32 %v3229_v26  ;;  %v1159_v41 = vsub.f32 0.0, %v1081_v38  ;;  %v1161_v42 = vsub.f32 0.0, %v1152_v50  ;;  %4330 = vst [vmem:[#allocation9_spill] sm:$0xff] %v3501_v16  ;;  %v3512_v28 = vmul.f32 0.6931472, %v3458_v46 }
 0x29c   : > { %2609 = vlog2.f32 %v3318_v12  ;;  %v1170_v44 = vmul.f32 1.442695, %v1158_v39  ;;  %v1174_v45 = vmul.f32 1.442695, %v1160_v40  ;;  %v2001_v12 = vsub.f32 1.0, %v3232_v27  ;;  %4331 = vst [vmem:[#allocation10_spill] sm:$0xff] %v3505_v23 }
 0x29d   : > { %2611 = vlog2.f32 %v1999_v37  ;;  %v1172_v47 = vmul.f32 1.442695, %v1159_v41  ;;  %v1176_v49 = vmul.f32 1.442695, %v1161_v42  ;;  %4333 = vst [vmem:[#allocation12_spill] sm:$0xff] %v3512_v28 }
 0x29e   : > { %2613 = vpow2.f32 %v1170_v44 }
 0x29f   : > { %2615 = vpow2.f32 %v1174_v45 }
 0x2a0   : > { %v2598_v52 = vpop.eup %2597  ;;  %2617 = vpow2.f32 %v1172_v47 }
 0x2a1   : > { %v2600_v53 = vpop.eup %2599  ;;  %v3461_v26 = vadd.f32 1.0, %v2598_v52  ;;  %2619 = vpow2.f32 %v1176_v49 }
 0x2a2   : > { %v2602_v54 = vpop.eup %2601  ;;  %2621 = vlog2.f32 %v1998_v51  ;;  %v3463_v55 = vadd.f32 1.0, %v2600_v53 }
 0x2a3   : > { %v2604_v56 = vpop.eup %2603  ;;  %2623 = vrcp.f32 %v3461_v26  ;;  %v3466_v57 = vadd.f32 1.0, %v2602_v54 }
 0x2a4   : > { %v2606_v58 = vpop.eup %2605  ;;  %2625 = vrcp.f32 %v3463_v55  ;;  %v3470_v59 = vadd.f32 1.0, %v2604_v56 }
 0x2a5   : > { %v2608_v60 = vpop.eup %2607  ;;  %2627 = vrcp.f32 %v3466_v57  ;;  %v3514_v30 = vmul.f32 0.6931472, %v2606_v58 }
 0x2a6   : > { %v2610_v61 = vpop.eup %2609  ;;  %2629 = vrcp.f32 %v3470_v59  ;;  %v3516_v34 = vmul.f32 0.6931472, %v2608_v60 }
 0x2a7   : > { %v2612_v63 = vpop.eup %2611  ;;  %2631 = vlog2.f32 %v3232_v27  ;;  %4334 = vst [vmem:[#allocation13_spill] sm:$0xff] %v3514_v30  ;;  %v3518_v35 = vmul.f32 0.6931472, %v2610_v61 }
 0x2a8   : > { %v2614_v0 = vpop.eup %2613  ;;  %2633 = vlog2.f32 %v2001_v12  ;;  %4335 = vst [vmem:[#allocation14_spill] sm:$0xff] %v3516_v34  ;;  %v3520_v50 = vmul.f32 0.6931472, %v2612_v63 }
 0x2a9   : > { %v2616_v1 = vpop.eup %2615  ;;  %2635 = vlog2.f32 %v3321_v13  ;;  %v3477_v2 = vadd.f32 1.0, %v2614_v0  ;;  %4336 = vst [vmem:[#allocation15_spill] sm:$0xff] %v3518_v35 }
 0x2aa   : > { %v2618_v3 = vpop.eup %2617  ;;  %2637 = vlog2.f32 %v2000_v62  ;;  %v3479_v17 = vadd.f32 1.0, %v2616_v1  ;;  %4337 = vst [vmem:[#allocation16_spill] sm:$0xff] %v3520_v50 }
 0x2ab   : > { %v2620_v4 = vpop.eup %2619  ;;  %2639 = vrcp.f32 %v3477_v2  ;;  %v3482_v48 = vadd.f32 1.0, %v2618_v3 }
 0x2ac   : > { %v2622_v5 = vpop.eup %2621  ;;  %2641 = vrcp.f32 %v3479_v17  ;;  %v3485_v27 = vadd.f32 1.0, %v2620_v4 }
 0x2ad   : > { %v2624_v6 = vpop.eup %2623  ;;  %2643 = vrcp.f32 %v3482_v48  ;;  %v3522_v39 = vmul.f32 0.6931472, %v2622_v5 }
 0x2ae   : > { %v2626_v13 = vpop.eup %2625  ;;  %v1194_v7 = vmul.f32 %v2624_v6, %v3461_v26  ;;  %2645 = vrcp.f32 %v3485_v27 }
 0x2af   : > { %v2628_v8 = vpop.eup %2627  ;;  %v1196_v21 = vmul.f32 %v2626_v13, %v3463_v55  ;;  %4338 = vst [vmem:[#allocation17_spill] sm:$0xff] %v3522_v39 }
 0x2b0   : > { %v2630_v14 = vpop.eup %2629  ;;  %v1202_v19 = vsub.f32 2.0, %v1194_v7  ;;  %v1195_v20 = vmul.f32 %v2628_v8, %v3466_v57 }
 0x2b1   : > { %v2632_v22 = vpop.eup %2631  ;;  %v1204_v24 = vsub.f32 2.0, %v1196_v21  ;;  %v1197_v25 = vmul.f32 %v2630_v14, %v3470_v59 }
 0x2b2   : > { %v2634_v29 = vpop.eup %2633  ;;  %v1210_v31 = vmul.f32 %v2624_v6, %v1202_v19  ;;  %v1203_v32 = vsub.f32 2.0, %v1195_v20  ;;  %v3527_v43 = vmul.f32 0.6931472, %v2632_v22 }
 0x2b3   : > { %v2636_v33 = vpop.eup %2635  ;;  %v1212_v36 = vmul.f32 %v2626_v13, %v1204_v24  ;;  %v1205_v37 = vsub.f32 2.0, %v1197_v25  ;;  %v3529_v44 = vmul.f32 0.6931472, %v2634_v29 }
 0x2b4   : > { %v2638_v38 = vpop.eup %2637  ;;  %v1218_v40 = vmul.f32 %v1210_v31, %v3461_v26  ;;  %v1211_v41 = vmul.f32 %v2628_v8, %v1203_v32  ;;  %4339 = vst [vmem:[#allocation18_spill] sm:$0xff] %v3527_v43  ;;  %v3532_v49 = vmul.f32 0.6931472, %v2636_v33 }
 0x2b5   : > { %v2640_v42 = vpop.eup %2639  ;;  %4340 = vst [vmem:[#allocation19_spill] sm:$0xff] %v3529_v44  ;;  %v1220_v45 = vmul.f32 %v1212_v36, %v3463_v55  ;;  %v1213_v46 = vmul.f32 %v2630_v14, %v1205_v37  ;;  %v3536_v56 = vmul.f32 0.6931472, %v2638_v38 }
 0x2b6   : > { %v2642_v47 = vpop.eup %2641  ;;  %4341 = vst [vmem:[#allocation20_spill] sm:$0xff] %v3532_v49  ;;  %v1226_v51 = vsub.f32 2.0, %v1218_v40  ;;  %v1219_v52 = vmul.f32 %v1211_v41, %v3466_v57  ;;  %v1198_v53 = vmul.f32 %v2640_v42, %v3477_v2 }
 0x2b7   : > { %v2644_v54 = vpop.eup %2643  ;;  %4342 = vst [vmem:[#allocation21_spill] sm:$0xff] %v3536_v56  ;;  %v1228_v26 = vsub.f32 2.0, %v1220_v45  ;;  %v1221_v58 = vmul.f32 %v1213_v46, %v3470_v59  ;;  %v1200_v12 = vmul.f32 %v2642_v47, %v3479_v17 }
 0x2b8   : > { %v2646_v60 = vpop.eup %2645  ;;  %v1234_v61 = vmul.f32 %v1226_v51, %v1210_v31  ;;  %v1227_v55 = vsub.f32 2.0, %v1219_v52  ;;  %v1206_v62 = vsub.f32 2.0, %v1198_v53  ;;  %v1199_v63 = vmul.f32 %v2644_v54, %v3482_v48 }
 0x2b9   : > { %v1236_v0 = vmul.f32 %v1228_v26, %v1212_v36  ;;  %v1229_v1 = vsub.f32 2.0, %v1221_v58  ;;  %v1208_v3 = vsub.f32 2.0, %v1200_v12  ;;  %v1201_v57 = vmul.f32 %v2646_v60, %v3485_v27 }
 0x2ba   : > { %v3542_v4 = vmul.f32 100.0, %v1234_v61  ;;  %2057 = vst [vmem:[%s3544_s19] sm:$0xff] %v1234_v61  ;;  %v1235_v59 = vmul.f32 %v1227_v55, %v1211_v41  ;;  %v1214_v5 = vmul.f32 %v2640_v42, %v1206_v62  ;;  %v1207_v6 = vsub.f32 2.0, %v1199_v63 }
 0x2bb   : > { %v3547_v13 = vmul.f32 100.0, %v1236_v0  ;;  %2059 = vst [vmem:[%s3544_s19 + $0x10] sm:$0xff] %v1236_v0  ;;  %v1237_v7 = vmul.f32 %v1229_v1, %v1213_v46  ;;  %v1216_v8 = vmul.f32 %v2642_v47, %v1208_v3  ;;  %v1209_v21 = vsub.f32 2.0, %v1201_v57 }
 0x2bc   : > { %4343 = vst [vmem:[#allocation22_spill] sm:$0xff] %v3542_v4  ;;  %v3550_v14 = vmul.f32 100.0, %v1235_v59  ;;  %2058 = vst [vmem:[%s3544_s19 + $0x8] sm:$0xff] %v1235_v59  ;;  %v1222_v19 = vmul.f32 %v1214_v5, %v3477_v2  ;;  %v1215_v20 = vmul.f32 %v2644_v54, %v1207_v6  ;;  %v3555_v22 = vsub.f32 100.0, %v3542_v4 }
 0x2bd   : > { %4344 = vst [vmem:[#allocation23_spill] sm:$0xff] %v3547_v13  ;;  %v3557_v24 = vmul.f32 100.0, %v1237_v7  ;;  %2060 = vst [vmem:[%s3544_s19 + $0x18] sm:$0xff] %v1237_v7  ;;  %v1224_v25 = vmul.f32 %v1216_v8, %v3479_v17  ;;  %v1217_v29 = vmul.f32 %v2646_v60, %v1209_v21  ;;  %v3562_v31 = vsub.f32 100.0, %v3547_v13 }
 0x2be   : > { %4345 = vst [vmem:[#allocation24_spill] sm:$0xff] %v3550_v14  ;;  %4346 = vst [vmem:[#allocation25_spill] sm:$0xff] %v3555_v22  ;;  %v1230_v32 = vsub.f32 2.0, %v1222_v19  ;;  %v1223_v33 = vmul.f32 %v1215_v20, %v3482_v48  ;;  %v3566_v36 = vsub.f32 100.0, %v3550_v14  ;;  %v3569_v2 = vadd.f32 7.5, %v3542_v4 }
 0x2bf   : > { %4347 = vst [vmem:[#allocation26_spill] sm:$0xff] %v3557_v24  ;;  %v1232_v37 = vsub.f32 2.0, %v1224_v25  ;;  %v1225_v38 = vmul.f32 %v1217_v29, %v3485_v27  ;;  %v3573_v40 = vsub.f32 100.0, %v3557_v24  ;;  %v3576_v17 = vadd.f32 7.5, %v3550_v14 }
 0x2c0   : > { %4348 = vst [vmem:[#allocation27_spill] sm:$0xff] %v3569_v2  ;;  %v1238_v41 = vmul.f32 %v1230_v32, %v1214_v5  ;;  %v1231_v42 = vsub.f32 2.0, %v1223_v33  ;;  %v3579_v48 = vadd.f32 7.5, %v3547_v13  ;;  %v3582_v45 = vadd.f32 7.5, %v3557_v24 }
 0x2c1   : > { %4349 = vst [vmem:[#allocation28_spill] sm:$0xff] %v3576_v17  ;;  %v1240_v46 = vmul.f32 %v1232_v37, %v1216_v8  ;;  %v1233_v47 = vsub.f32 2.0, %v1225_v38  ;;  %v3585_v27 = vadd.f32 7.5, %v3555_v22  ;;  %v3588_v51 = vadd.f32 7.5, %v3566_v36 }
 0x2c2   : > { %4350 = vst [vmem:[#allocation29_spill] sm:$0xff] %v3579_v48  ;;  %4351 = vst [vmem:[#allocation30_spill] sm:$0xff] %v3582_v45  ;;  %v3590_v52 = vmul.f32 100.0, %v1238_v41  ;;  %v1239_v53 = vmul.f32 %v1231_v42, %v1215_v20  ;;  %v3594_v54 = vadd.f32 7.5, %v3562_v31  ;;  %v3597_v26 = vadd.f32 7.5, %v3573_v40 }
 0x2c3   : > { %4352 = vst [vmem:[#allocation31_spill] sm:$0xff] %v3585_v27  ;;  %2061 = vst [vmem:[%s3544_s19 + $0x20] sm:$0xff] %v1238_v41  ;;  %v3599_v58 = vmul.f32 100.0, %v1240_v46  ;;  %v1241_v12 = vmul.f32 %v1233_v47, %v1217_v29  ;;  %v1274_v60 = vadd.f32 60.458332, %v3542_v4  ;;  %2647 = vlog2.f32 %v3569_v2 }
 0x2c4   : > { %4353 = vst [vmem:[#allocation32_spill] sm:$0xff] %v3590_v52  ;;  %2063 = vst [vmem:[%s3544_s19 + $0x30] sm:$0xff] %v1240_v46  ;;  %v1275_v61 = vadd.f32 60.458332, %v3550_v14  ;;  %v3604_v55 = vmul.f32 100.0, %v1239_v53  ;;  %v3608_v62 = vsub.f32 100.0, %v3590_v52  ;;  %2649 = vlog2.f32 %v3576_v17 }
 0x2c5   : > { %4354 = vst [vmem:[#allocation33_spill] sm:$0xff] %v3599_v58  ;;  %2062 = vst [vmem:[%s3544_s19 + $0x28] sm:$0xff] %v1239_v53  ;;  %v3611_v63 = vadd.f32 7.5, %v3590_v52  ;;  %v1276_v0 = vadd.f32 60.458332, %v3547_v13  ;;  %v3614_v1 = vmul.f32 100.0, %v1241_v12  ;;  %v1282_v37 = vmul.f32 %v1274_v60, %v3542_v4 }
 0x2c6   : > { %4355 = vst [vmem:[#allocation34_spill] sm:$0xff] %v3604_v55  ;;  %2064 = vst [vmem:[%s3544_s19 + $0x38] sm:$0xff] %v1241_v12  ;;  %v3618_v3 = vsub.f32 100.0, %v3599_v58  ;;  %v3621_v57 = vadd.f32 7.5, %v3599_v58  ;;  %v1277_v59 = vadd.f32 60.458332, %v3557_v24  ;;  %v1283_v41 = vmul.f32 %v1275_v61, %v3550_v14 }
 0x2c7   : > { %4356 = vst [vmem:[#allocation35_spill] sm:$0xff] %v3611_v63  ;;  %4357 = vst [vmem:[#allocation36_spill] sm:$0xff] %v3614_v1  ;;  %v3625_v5 = vsub.f32 100.0, %v3604_v55  ;;  %v3628_v6 = vadd.f32 7.5, %v3604_v55  ;;  %v3631_v7 = vadd.f32 7.5, %v3608_v62  ;;  %v3635_v21 = vsub.f32 100.0, %v3614_v1 }
 0x2c8   : > { %4358 = vst [vmem:[#allocation37_spill] sm:$0xff] %v3621_v57  ;;  %v1278_v8 = vadd.f32 60.458332, %v3590_v52  ;;  %v3638_v19 = vadd.f32 7.5, %v3614_v1  ;;  %v3641_v20 = vadd.f32 7.5, %v3618_v3  ;;  %v1284_v42 = vmul.f32 %v1276_v0, %v3547_v13 }
 0x2c9   : > { %4359 = vst [vmem:[#allocation38_spill] sm:$0xff] %v3628_v6  ;;  %v1279_v25 = vadd.f32 60.458332, %v3604_v55  ;;  %v3645_v29 = vadd.f32 7.5, %v3625_v5  ;;  %v1280_v32 = vadd.f32 60.458332, %v3599_v58  ;;  %v1285_v46 = vmul.f32 %v1277_v59, %v3557_v24 }
 0x2ca   : > { %4360 = vst [vmem:[#allocation39_spill] sm:$0xff] %v3638_v19  ;;  %v1281_v33 = vadd.f32 60.458332, %v3614_v1  ;;  %v3651_v38 = vadd.f32 7.5, %v3635_v21  ;;  %v1286_v47 = vmul.f32 %v1278_v8, %v3590_v52  ;;  %v1290_v44 = vadd.f32 1599.0425, %v1282_v37 }
 0x2cb   : > { %v1287_v53 = vmul.f32 %v1279_v25, %v3604_v55  ;;  %v1288_v12 = vmul.f32 %v1280_v32, %v3599_v58  ;;  %v1291_v56 = vadd.f32 1599.0425, %v1283_v41  ;;  %v1292_v60 = vadd.f32 1599.0425, %v1284_v42 }
 0x2cc   : > { %4361 = vst [vmem:[#allocation40_spill] sm:$0xff] %v3651_v38  ;;  %v1289_v9 = vmul.f32 %v1281_v33, %v3614_v1  ;;  %v1293_v50 = vadd.f32 1599.0425, %v1285_v46  ;;  %v1294_v39 = vadd.f32 1599.0425, %v1286_v47  ;;  %v1298_v8 = vmul.f32 %v1290_v44, %v3542_v4 }
 0x2cd   : > { %v1295_v61 = vadd.f32 1599.0425, %v1287_v53  ;;  %v1296_v0 = vadd.f32 1599.0425, %v1288_v12  ;;  %v1299_v25 = vmul.f32 %v1291_v56, %v3550_v14  ;;  %v1300_v32 = vmul.f32 %v1292_v60, %v3547_v13 }
 0x2ce   : > { %v1297_v59 = vadd.f32 1599.0425, %v1289_v9  ;;  %v1301_v33 = vmul.f32 %v1293_v50, %v3557_v24  ;;  %v1302_v37 = vmul.f32 %v1294_v39, %v3590_v52  ;;  %v1306_v47 = vadd.f32 24165.51, %v1298_v8 }
 0x2cf   : > { %v1303_v41 = vmul.f32 %v1295_v61, %v3604_v55  ;;  %v1304_v42 = vmul.f32 %v1296_v0, %v3599_v58  ;;  %v1307_v53 = vadd.f32 24165.51, %v1299_v25  ;;  %v1308_v12 = vadd.f32 24165.51, %v1300_v32 }
 0x2d0   : > { %v1305_v46 = vmul.f32 %v1297_v59, %v3614_v1  ;;  %v1309_v9 = vadd.f32 24165.51, %v1301_v33  ;;  %v1310_v18 = vadd.f32 24165.51, %v1302_v37  ;;  %2651 = vlog2.f32 %v3579_v48 }
 0x2d1   : > { %v1311_v44 = vadd.f32 24165.51, %v1303_v41  ;;  %v1312_v56 = vadd.f32 24165.51, %v1304_v42  ;;  %v1314_v50 = vmul.f32 %v1306_v47, %v3542_v4  ;;  %v1315_v39 = vmul.f32 %v1307_v53, %v3550_v14 }
 0x2d2   : > { %v1313_v60 = vadd.f32 24165.51, %v1305_v46  ;;  %v1316_v61 = vmul.f32 %v1308_v12, %v3547_v13  ;;  %v1317_v0 = vmul.f32 %v1309_v9, %v3557_v24  ;;  %v1318_v59 = vmul.f32 %v1310_v18, %v3590_v52  ;;  %v3680_v46 = vpop.eup %2647 }
 0x2d3   : > { %v1319_v8 = vmul.f32 %v1311_v44, %v3604_v55  ;;  %v1320_v25 = vmul.f32 %v1312_v56, %v3599_v58  ;;  %v1322_v33 = vadd.f32 228235.22, %v1314_v50  ;;  %v1323_v37 = vadd.f32 228235.22, %v1315_v39  ;;  %v3683_v18 = vpop.eup %2649 }
 0x2d4   : > { %v1321_v32 = vmul.f32 %v1313_v60, %v3614_v1  ;;  %v1324_v41 = vadd.f32 228235.22, %v1316_v61  ;;  %v1325_v42 = vadd.f32 228235.22, %v1317_v0  ;;  %2653 = vlog2.f32 %v3582_v45 }
 0x2d5   : > { %v1326_v47 = vadd.f32 228235.22, %v1318_v59  ;;  %v1327_v53 = vadd.f32 228235.22, %v1319_v8  ;;  %v1328_v12 = vadd.f32 228235.22, %v1320_v25  ;;  %v1330_v9 = vmul.f32 %v1322_v33, %v3542_v4 }
 0x2d6   : > { %v1329_v44 = vadd.f32 228235.22, %v1321_v32  ;;  %v1331_v56 = vmul.f32 %v1323_v37, %v3550_v14  ;;  %v1332_v60 = vmul.f32 %v1324_v41, %v3547_v13  ;;  %v1333_v50 = vmul.f32 %v1325_v42, %v3557_v24 }
 0x2d7   : > { %v1334_v39 = vmul.f32 %v1326_v47, %v3590_v52  ;;  %v1335_v61 = vmul.f32 %v1327_v53, %v3604_v55  ;;  %v1336_v0 = vmul.f32 %v1328_v12, %v3599_v58  ;;  %v1338_v59 = vadd.f32 1379496.3, %v1330_v9 }
 0x2d8   : > { %v1337_v8 = vmul.f32 %v1329_v44, %v3614_v1  ;;  %v1339_v25 = vadd.f32 1379496.3, %v1331_v56  ;;  %v1340_v33 = vadd.f32 1379496.3, %v1332_v60  ;;  %v1341_v30 = vadd.f32 1379496.3, %v1333_v50 }
 0x2d9   : > { %v1342_v15 = vadd.f32 1379496.3, %v1334_v39  ;;  %v1343_v32 = vadd.f32 1379496.3, %v1335_v61  ;;  %v1344_v16 = vadd.f32 1379496.3, %v1336_v0  ;;  %v1346_v37 = vmul.f32 %v1338_v59, %v3542_v4 }
 0x2da   : > { %v3693_v41 = vpop.eup %2651  ;;  %v1345_v42 = vadd.f32 1379496.3, %v1337_v8  ;;  %v1347_v47 = vmul.f32 %v1339_v25, %v3550_v14  ;;  %v1348_v53 = vmul.f32 %v1340_v33, %v3547_v13  ;;  %v1349_v12 = vmul.f32 %v1341_v30, %v3557_v24 }
 0x2db   : > { %v1350_v9 = vmul.f32 %v1342_v15, %v3590_v52  ;;  %v1351_v44 = vmul.f32 %v1343_v32, %v3604_v55  ;;  %v1352_v56 = vmul.f32 %v1344_v16, %v3599_v58  ;;  %v1354_v60 = vadd.f32 5210869.0, %v1346_v37 }
 0x2dc   : > { %v1353_v50 = vmul.f32 %v1345_v42, %v3614_v1  ;;  %v1355_v39 = vadd.f32 5210869.0, %v1347_v47  ;;  %v1356_v61 = vadd.f32 5210869.0, %v1348_v53  ;;  %v1357_v0 = vadd.f32 5210869.0, %v1349_v12 }
 0x2dd   : > { %v1358_v59 = vadd.f32 5210869.0, %v1350_v9  ;;  %v1359_v8 = vadd.f32 5210869.0, %v1351_v44  ;;  %v1360_v43 = vadd.f32 5210869.0, %v1352_v56  ;;  %v1362_v25 = vmul.f32 %v1354_v60, %v3542_v4 }
 0x2de   : > { %v3703_v33 = vpop.eup %2653  ;;  %v1361_v30 = vadd.f32 5210869.0, %v1353_v50  ;;  %v1363_v15 = vmul.f32 %v1355_v39, %v3550_v14  ;;  %v1364_v32 = vmul.f32 %v1356_v61, %v3547_v13  ;;  %v1365_v16 = vmul.f32 %v1357_v0, %v3557_v24 }
 0x2df   : > { %v1366_v37 = vmul.f32 %v1358_v59, %v3590_v52  ;;  %v1367_v42 = vmul.f32 %v1359_v8, %v3604_v55  ;;  %v1368_v47 = vmul.f32 %v1360_v43, %v3599_v58  ;;  %v1370_v53 = vadd.f32 11246929.0, %v1362_v25 }
 0x2e0   : > { %v1369_v12 = vmul.f32 %v1361_v30, %v3614_v1  ;;  %v1371_v9 = vadd.f32 11246929.0, %v1363_v15  ;;  %v1372_v44 = vadd.f32 11246929.0, %v1364_v32  ;;  %v1373_v56 = vadd.f32 11246929.0, %v1365_v16 }
 0x2e1   : > { %v1374_v60 = vadd.f32 11246929.0, %v1366_v37  ;;  %v1375_v50 = vadd.f32 11246929.0, %v1367_v42  ;;  %v1376_v49 = vadd.f32 11246929.0, %v1368_v47  ;;  %v1378_v39 = vmul.f32 %v1370_v53, %v3542_v4 }
 0x2e2   : > { %v1377_v61 = vadd.f32 11246929.0, %v1369_v12  ;;  %v1379_v0 = vmul.f32 %v1371_v9, %v3550_v14  ;;  %v1380_v59 = vmul.f32 %v1372_v44, %v3547_v13  ;;  %v1381_v8 = vmul.f32 %v1373_v56, %v3557_v24 }
 0x2e3   : > { %v1382_v43 = vmul.f32 %v1374_v60, %v3590_v52  ;;  %v1383_v25 = vmul.f32 %v1375_v50, %v3604_v55  ;;  %v1384_v30 = vmul.f32 %v1376_v49, %v3599_v58  ;;  %v3719_v15 = vadd.f32 10619610.0, %v1378_v39 }
 0x2e4   : > { %v1385_v32 = vmul.f32 %v1377_v61, %v3614_v1  ;;  %v3722_v16 = vadd.f32 10619610.0, %v1379_v0  ;;  %v3724_v37 = vadd.f32 10619610.0, %v1380_v59  ;;  %v3726_v42 = vadd.f32 10619610.0, %v1381_v8 }
 0x2e5   : > { %v3728_v47 = vadd.f32 10619610.0, %v1382_v43  ;;  %v3730_v53 = vadd.f32 10619610.0, %v1383_v25  ;;  %v3732_v12 = vadd.f32 10619610.0, %v1384_v30  ;;  %2655 = vlog2.f32 %v3611_v63 }
 0x2e6   : > { %v3735_v9 = vadd.f32 10619610.0, %v1385_v32  ;;  %v1394_v49 = vadd.f32 36.0, %v3542_v4  ;;  %v1395_v44 = vadd.f32 36.0, %v3550_v14  ;;  %v1396_v56 = vadd.f32 36.0, %v3547_v13 }
 0x2e7   : > { %4362 = vst [vmem:[#allocation41_spill] sm:$0xff] %v3732_v12  ;;  %v1397_v60 = vadd.f32 36.0, %v3557_v24  ;;  %v1398_v50 = vadd.f32 36.0, %v3590_v52  ;;  %v1399_v39 = vadd.f32 36.0, %v3604_v55  ;;  %v1400_v61 = vadd.f32 36.0, %v3599_v58 }
 0x2e8   : > { %4363 = vst [vmem:[#allocation42_spill] sm:$0xff] %v3735_v9  ;;  %v1401_v0 = vadd.f32 36.0, %v3614_v1  ;;  %v1402_v59 = vmul.f32 %v1394_v49, %v3542_v4  ;;  %v1403_v8 = vmul.f32 %v1395_v44, %v3550_v14  ;;  %v1404_v43 = vmul.f32 %v1396_v56, %v3547_v13 }
 0x2e9   : > { %v1405_v25 = vmul.f32 %v1397_v60, %v3557_v24  ;;  %v1406_v30 = vmul.f32 %v1398_v50, %v3590_v52  ;;  %v1407_v32 = vmul.f32 %v1399_v39, %v3604_v55  ;;  %v1408_v34 = vmul.f32 %v1400_v61, %v3599_v58 }
 0x2ea   : > { %v1409_v35 = vmul.f32 %v1401_v0, %v3614_v1  ;;  %v1410_v23 = vadd.f32 546.0, %v1402_v59  ;;  %v1411_v28 = vadd.f32 546.0, %v1403_v8  ;;  %v1412_v10 = vadd.f32 546.0, %v1404_v43 }
 0x2eb   : > { %v1413_v11 = vadd.f32 546.0, %v1405_v25  ;;  %v1414_v63 = vadd.f32 546.0, %v1406_v30  ;;  %v1415_v49 = vadd.f32 546.0, %v1407_v32  ;;  %v1416_v45 = vadd.f32 546.0, %v1408_v34 }
 0x2ec   : > { %v1417_v44 = vadd.f32 546.0, %v1409_v35  ;;  %v1418_v56 = vmul.f32 %v1410_v23, %v3542_v4  ;;  %v1419_v60 = vmul.f32 %v1411_v28, %v3550_v14  ;;  %v1420_v50 = vmul.f32 %v1412_v10, %v3547_v13 }
 0x2ed   : > { %v1421_v39 = vmul.f32 %v1413_v11, %v3557_v24  ;;  %v1422_v61 = vmul.f32 %v1414_v63, %v3590_v52  ;;  %v1423_v0 = vmul.f32 %v1415_v49, %v3604_v55  ;;  %v1424_v59 = vmul.f32 %v1416_v45, %v3599_v58 }
 0x2ee   : > { %v1425_v8 = vmul.f32 %v1417_v44, %v3614_v1  ;;  %v1426_v43 = vadd.f32 4536.0, %v1418_v56  ;;  %v1427_v25 = vadd.f32 4536.0, %v1419_v60  ;;  %v1428_v34 = vadd.f32 4536.0, %v1420_v50 }
 0x2ef   : > { %v3761_v35 = vpop.eup %2655  ;;  %v1429_v23 = vadd.f32 4536.0, %v1421_v39  ;;  %v1430_v30 = vadd.f32 4536.0, %v1422_v61  ;;  %v1431_v28 = vadd.f32 4536.0, %v1423_v0  ;;  %v1432_v32 = vadd.f32 4536.0, %v1424_v59 }
 0x2f0   : > { %v1433_v10 = vadd.f32 4536.0, %v1425_v8  ;;  %v1434_v11 = vmul.f32 %v1426_v43, %v3542_v4  ;;  %v1435_v63 = vmul.f32 %v1427_v25, %v3550_v14  ;;  %v1436_v49 = vmul.f32 %v1428_v34, %v3547_v13 }
 0x2f1   : > { %v1437_v45 = vmul.f32 %v1429_v23, %v3557_v24  ;;  %v1438_v44 = vmul.f32 %v1430_v30, %v3590_v52  ;;  %v1439_v56 = vmul.f32 %v1431_v28, %v3604_v55  ;;  %v1440_v60 = vmul.f32 %v1432_v32, %v3599_v58 }
 0x2f2   : > { %v1441_v50 = vmul.f32 %v1433_v10, %v3614_v1  ;;  %v1442_v39 = vadd.f32 22449.0, %v1434_v11  ;;  %v1443_v61 = vadd.f32 22449.0, %v1435_v63  ;;  %v1444_v0 = vadd.f32 22449.0, %v1436_v49 }
 0x2f3   : > { %v1445_v59 = vadd.f32 22449.0, %v1437_v45  ;;  %v1446_v8 = vadd.f32 22449.0, %v1438_v44  ;;  %v1447_v43 = vadd.f32 22449.0, %v1439_v56  ;;  %2657 = vlog2.f32 %v3628_v6 }
 0x2f4   : > { %v1448_v25 = vadd.f32 22449.0, %v1440_v60  ;;  %v1449_v34 = vadd.f32 22449.0, %v1441_v50  ;;  %v1450_v23 = vmul.f32 %v1442_v39, %v3542_v4  ;;  %v1451_v30 = vmul.f32 %v1443_v61, %v3550_v14 }
 0x2f5   : > { %v1452_v28 = vmul.f32 %v1444_v0, %v3547_v13  ;;  %v1453_v32 = vmul.f32 %v1445_v59, %v3557_v24  ;;  %v1454_v10 = vmul.f32 %v1446_v8, %v3590_v52  ;;  %v1455_v11 = vmul.f32 %v1447_v43, %v3604_v55 }
 0x2f6   : > { %v1456_v63 = vmul.f32 %v1448_v25, %v3599_v58  ;;  %v1457_v49 = vmul.f32 %v1449_v34, %v3614_v1  ;;  %v1458_v45 = vadd.f32 67284.0, %v1450_v23  ;;  %v1459_v44 = vadd.f32 67284.0, %v1451_v30 }
 0x2f7   : > { %v1460_v56 = vadd.f32 67284.0, %v1452_v28  ;;  %v1461_v60 = vadd.f32 67284.0, %v1453_v32  ;;  %v1462_v50 = vadd.f32 67284.0, %v1454_v10  ;;  %2659 = vlog2.f32 %v3621_v57 }
 0x2f8   : > { %v1463_v39 = vadd.f32 67284.0, %v1455_v11  ;;  %v1464_v61 = vadd.f32 67284.0, %v1456_v63  ;;  %v1465_v0 = vadd.f32 67284.0, %v1457_v49  ;;  %v1466_v59 = vmul.f32 %v1458_v45, %v3542_v4 }
 0x2f9   : > { %v1467_v8 = vmul.f32 %v1459_v44, %v3550_v14  ;;  %v1468_v43 = vmul.f32 %v1460_v56, %v3547_v13  ;;  %v1469_v25 = vmul.f32 %v1461_v60, %v3557_v24  ;;  %v1470_v34 = vmul.f32 %v1462_v50, %v3590_v52 }
 0x2fa   : > { %v1471_v23 = vmul.f32 %v1463_v39, %v3604_v55  ;;  %v1472_v30 = vmul.f32 %v1464_v61, %v3599_v58  ;;  %v1473_v28 = vmul.f32 %v1465_v0, %v3614_v1  ;;  %v1474_v32 = vadd.f32 118124.0, %v1466_v59 }
 0x2fb   : > { %v1475_v10 = vadd.f32 118124.0, %v1467_v8  ;;  %v1476_v11 = vadd.f32 118124.0, %v1468_v43  ;;  %v1477_v63 = vadd.f32 118124.0, %v1469_v25  ;;  %2661 = vlog2.f32 %v3638_v19 }
 0x2fc   : > { %v1478_v49 = vadd.f32 118124.0, %v1470_v34  ;;  %v1479_v45 = vadd.f32 118124.0, %v1471_v23  ;;  %v1480_v44 = vadd.f32 118124.0, %v1472_v30  ;;  %v1482_v56 = vmul.f32 %v1474_v32, %v3542_v4 }
 0x2fd   : > { %v3791_v60 = vpop.eup %2657  ;;  %v1481_v50 = vadd.f32 118124.0, %v1473_v28  ;;  %v1483_v39 = vmul.f32 %v1475_v10, %v3550_v14  ;;  %v1484_v61 = vmul.f32 %v1476_v11, %v3547_v13  ;;  %v1485_v0 = vmul.f32 %v1477_v63, %v3557_v24 }
 0x2fe   : > { %v1486_v59 = vmul.f32 %v1478_v49, %v3590_v52  ;;  %v1487_v8 = vmul.f32 %v1479_v45, %v3604_v55  ;;  %v1488_v43 = vmul.f32 %v1480_v44, %v3599_v58  ;;  %v1490_v25 = vadd.f32 109584.0, %v1482_v56 }
 0x2ff   : > { %v1489_v34 = vmul.f32 %v1481_v50, %v3614_v1  ;;  %v1491_v23 = vadd.f32 109584.0, %v1483_v39  ;;  %v1492_v30 = vadd.f32 109584.0, %v1484_v61  ;;  %v1493_v32 = vadd.f32 109584.0, %v1485_v0 }
 0x300   : > { %v1494_v19 = vadd.f32 109584.0, %v1486_v59  ;;  %v1495_v28 = vadd.f32 109584.0, %v1487_v8  ;;  %v1496_v57 = vadd.f32 109584.0, %v1488_v43  ;;  %v1498_v10 = vmul.f32 %v1490_v25, %v3542_v4 }
 0x301   : > { %v3801_v11 = vpop.eup %2659  ;;  %v1497_v63 = vadd.f32 109584.0, %v1489_v34  ;;  %v1499_v49 = vmul.f32 %v1491_v23, %v3550_v14  ;;  %v1500_v45 = vmul.f32 %v1492_v30, %v3547_v13  ;;  %v1501_v44 = vmul.f32 %v1493_v32, %v3557_v24 }
 0x302   : > { %v1502_v56 = vmul.f32 %v1494_v19, %v3590_v52  ;;  %v1503_v50 = vmul.f32 %v1495_v28, %v3604_v55  ;;  %v1504_v39 = vmul.f32 %v1496_v57, %v3599_v58  ;;  %v3809_v61 = vadd.f32 40320.0, %v1498_v10 }
 0x303   : > { %v1505_v0 = vmul.f32 %v1497_v63, %v3614_v1  ;;  %v3812_v59 = vadd.f32 40320.0, %v1499_v49  ;;  %v3814_v8 = vadd.f32 40320.0, %v1500_v45  ;;  %v3816_v43 = vadd.f32 40320.0, %v1501_v44 }
 0x304   : > { %4364 = vst [vmem:[#allocation43_spill] sm:$0xff] %v3809_v61  ;;  %v3818_v25 = vadd.f32 40320.0, %v1502_v56  ;;  %v3820_v34 = vadd.f32 40320.0, %v1503_v50  ;;  %v3822_v23 = vadd.f32 40320.0, %v1504_v39  ;;  %v1514_v19 = vadd.f32 60.458332, %v3555_v22 }
 0x305   : > { %4365 = vst [vmem:[#allocation44_spill] sm:$0xff] %v3812_v59  ;;  %4366 = vst [vmem:[#allocation45_spill] sm:$0xff] %v3814_v8  ;;  %v3825_v30 = vpop.eup %2661  ;;  %v3827_v57 = vadd.f32 40320.0, %v1505_v0  ;;  %v1515_v32 = vadd.f32 60.458332, %v3566_v36  ;;  %v3832_v10 = vadd.f32 36.0, %v3555_v22  ;;  %2663 = vlog2.f32 %v3585_v27 }
 0x306   : > { %4367 = vst [vmem:[#allocation46_spill] sm:$0xff] %v3816_v43  ;;  %4368 = vst [vmem:[#allocation47_spill] sm:$0xff] %v3818_v25  ;;  %v1516_v28 = vadd.f32 60.458332, %v3562_v31  ;;  %v1517_v63 = vadd.f32 60.458332, %v3573_v40  ;;  %v1522_v44 = vmul.f32 %v1514_v19, %v3555_v22  ;;  %2665 = vlog2.f32 %v3588_v51 }
 0x307   : > { %4369 = vst [vmem:[#allocation48_spill] sm:$0xff] %v3820_v34  ;;  %4370 = vst [vmem:[#allocation49_spill] sm:$0xff] %v3822_v23  ;;  %v1518_v49 = vadd.f32 60.458332, %v3608_v62  ;;  %v1519_v45 = vadd.f32 60.458332, %v3625_v5  ;;  %v1523_v39 = vmul.f32 %v1515_v32, %v3566_v36  ;;  %2667 = vlog2.f32 %v3594_v54 }
 0x308   : > { %4371 = vst [vmem:[#allocation50_spill] sm:$0xff] %v3827_v57  ;;  %v1520_v56 = vadd.f32 60.458332, %v3618_v3  ;;  %v1521_v50 = vadd.f32 60.458332, %v3635_v21  ;;  %v1524_v0 = vmul.f32 %v1516_v28, %v3562_v31  ;;  %v1525_v6 = vmul.f32 %v1517_v63, %v3573_v40 }
 0x309   : > { %v1526_v48 = vmul.f32 %v1518_v49, %v3608_v62  ;;  %v1527_v17 = vmul.f32 %v1519_v45, %v3625_v5  ;;  %v1530_v57 = vadd.f32 1599.0425, %v1522_v44  ;;  %v1531_v19 = vadd.f32 1599.0425, %v1523_v39 }
 0x30a   : > { %v1528_v23 = vmul.f32 %v1520_v56, %v3618_v3  ;;  %v1529_v34 = vmul.f32 %v1521_v50, %v3635_v21  ;;  %v1532_v2 = vadd.f32 1599.0425, %v1524_v0  ;;  %v1533_v25 = vadd.f32 1599.0425, %v1525_v6 }
 0x30b   : > { %v1534_v43 = vadd.f32 1599.0425, %v1526_v48  ;;  %v1535_v8 = vadd.f32 1599.0425, %v1527_v17  ;;  %v1538_v32 = vmul.f32 %v1530_v57, %v3555_v22  ;;  %v1539_v63 = vmul.f32 %v1531_v19, %v3566_v36 }
 0x30c   : > { %v1536_v59 = vadd.f32 1599.0425, %v1528_v23  ;;  %v1537_v28 = vadd.f32 1599.0425, %v1529_v34  ;;  %v1540_v49 = vmul.f32 %v1532_v2, %v3562_v31  ;;  %v1541_v45 = vmul.f32 %v1533_v25, %v3573_v40 }
 0x30d   : > { %v1542_v44 = vmul.f32 %v1534_v43, %v3608_v62  ;;  %v1543_v56 = vmul.f32 %v1535_v8, %v3625_v5  ;;  %v1546_v50 = vadd.f32 24165.51, %v1538_v32  ;;  %v1547_v17 = vadd.f32 24165.51, %v1539_v63 }
 0x30e   : > { %v1544_v39 = vmul.f32 %v1536_v59, %v3618_v3  ;;  %v1545_v48 = vmul.f32 %v1537_v28, %v3635_v21  ;;  %v1548_v6 = vadd.f32 24165.51, %v1540_v49  ;;  %v1549_v57 = vadd.f32 24165.51, %v1541_v45 }
 0x30f   : > { %v1550_v23 = vadd.f32 24165.51, %v1542_v44  ;;  %v1551_v34 = vadd.f32 24165.51, %v1543_v56  ;;  %v1554_v0 = vmul.f32 %v1546_v50, %v3555_v22  ;;  %v1555_v25 = vmul.f32 %v1547_v17, %v3566_v36  ;;  %v3963_v27 = vpop.eup %2663 }
 0x310   : > { %v1552_v19 = vadd.f32 24165.51, %v1544_v39  ;;  %v1553_v2 = vadd.f32 24165.51, %v1545_v48  ;;  %v1556_v43 = vmul.f32 %v1548_v6, %v3562_v31  ;;  %v1557_v8 = vmul.f32 %v1549_v57, %v3573_v40 }
 0x311   : > { %v1558_v32 = vmul.f32 %v1550_v23, %v3608_v62  ;;  %v1559_v59 = vmul.f32 %v1551_v34, %v3625_v5  ;;  %v1562_v28 = vadd.f32 228235.22, %v1554_v0  ;;  %v1563_v45 = vadd.f32 228235.22, %v1555_v25 }
 0x312   : > { %v1560_v63 = vmul.f32 %v1552_v19, %v3618_v3  ;;  %v1561_v49 = vmul.f32 %v1553_v2, %v3635_v21  ;;  %v1564_v44 = vadd.f32 228235.22, %v1556_v43  ;;  %v1565_v56 = vadd.f32 228235.22, %v1557_v8 }
 0x313   : > { %v1566_v50 = vadd.f32 228235.22, %v1558_v32  ;;  %v1567_v39 = vadd.f32 228235.22, %v1559_v59  ;;  %v1570_v48 = vmul.f32 %v1562_v28, %v3555_v22  ;;  %v1571_v57 = vmul.f32 %v1563_v45, %v3566_v36 }
 0x314   : > { %v1568_v17 = vadd.f32 228235.22, %v1560_v63  ;;  %v1569_v6 = vadd.f32 228235.22, %v1561_v49  ;;  %v1572_v23 = vmul.f32 %v1564_v44, %v3562_v31  ;;  %v1573_v34 = vmul.f32 %v1565_v56, %v3573_v40 }
 0x315   : > { %v1574_v0 = vmul.f32 %v1566_v50, %v3608_v62  ;;  %v1575_v19 = vmul.f32 %v1567_v39, %v3625_v5  ;;  %v1578_v2 = vadd.f32 1379496.3, %v1570_v48  ;;  %v1579_v8 = vadd.f32 1379496.3, %v1571_v57 }
 0x316   : > { %v1576_v25 = vmul.f32 %v1568_v17, %v3618_v3  ;;  %v1577_v43 = vmul.f32 %v1569_v6, %v3635_v21  ;;  %v1580_v32 = vadd.f32 1379496.3, %v1572_v23  ;;  %v1581_v59 = vadd.f32 1379496.3, %v1573_v34 }
 0x317   : > { %v1582_v28 = vadd.f32 1379496.3, %v1574_v0  ;;  %v1583_v63 = vadd.f32 1379496.3, %v1575_v19  ;;  %v1586_v49 = vmul.f32 %v1578_v2, %v3555_v22  ;;  %v1587_v56 = vmul.f32 %v1579_v8, %v3566_v36 }
 0x318   : > { %v1584_v45 = vadd.f32 1379496.3, %v1576_v25  ;;  %v1585_v44 = vadd.f32 1379496.3, %v1577_v43  ;;  %v1588_v50 = vmul.f32 %v1580_v32, %v3562_v31  ;;  %v1589_v39 = vmul.f32 %v1581_v59, %v3573_v40 }
 0x319   : > { %v1590_v48 = vmul.f32 %v1582_v28, %v3608_v62  ;;  %v1591_v17 = vmul.f32 %v1583_v63, %v3625_v5  ;;  %v1594_v6 = vadd.f32 5210869.0, %v1586_v49  ;;  %v1595_v34 = vadd.f32 5210869.0, %v1587_v56 }
 0x31a   : > { %v1592_v57 = vmul.f32 %v1584_v45, %v3618_v3  ;;  %v1593_v23 = vmul.f32 %v1585_v44, %v3635_v21  ;;  %v1596_v0 = vadd.f32 5210869.0, %v1588_v50  ;;  %v1597_v19 = vadd.f32 5210869.0, %v1589_v39 }
 0x31b   : > { %v1598_v2 = vadd.f32 5210869.0, %v1590_v48  ;;  %v1599_v25 = vadd.f32 5210869.0, %v1591_v17  ;;  %v1602_v43 = vmul.f32 %v1594_v6, %v3555_v22  ;;  %v1603_v59 = vmul.f32 %v1595_v34, %v3566_v36 }
 0x31c   : > { %v1600_v8 = vadd.f32 5210869.0, %v1592_v57  ;;  %v1601_v32 = vadd.f32 5210869.0, %v1593_v23  ;;  %v1604_v28 = vmul.f32 %v1596_v0, %v3562_v31  ;;  %v1605_v63 = vmul.f32 %v1597_v19, %v3573_v40 }
 0x31d   : > { %v1606_v49 = vmul.f32 %v1598_v2, %v3608_v62  ;;  %v1607_v45 = vmul.f32 %v1599_v25, %v3625_v5  ;;  %v1610_v44 = vadd.f32 11246929.0, %v1602_v43  ;;  %v1611_v39 = vadd.f32 11246929.0, %v1603_v59 }
 0x31e   : > { %v1608_v56 = vmul.f32 %v1600_v8, %v3618_v3  ;;  %v1609_v50 = vmul.f32 %v1601_v32, %v3635_v21  ;;  %v1612_v48 = vadd.f32 11246929.0, %v1604_v28  ;;  %v1613_v17 = vadd.f32 11246929.0, %v1605_v63 }
 0x31f   : > { %v1614_v6 = vadd.f32 11246929.0, %v1606_v49  ;;  %v1615_v57 = vadd.f32 11246929.0, %v1607_v45  ;;  %v1618_v23 = vmul.f32 %v1610_v44, %v3555_v22  ;;  %v1619_v19 = vmul.f32 %v1611_v39, %v3566_v36 }
 0x320   : > { %v1616_v34 = vadd.f32 11246929.0, %v1608_v56  ;;  %v1617_v0 = vadd.f32 11246929.0, %v1609_v50  ;;  %v1620_v2 = vmul.f32 %v1612_v48, %v3562_v31  ;;  %v1621_v25 = vmul.f32 %v1613_v17, %v3573_v40 }
 0x321   : > { %v1622_v43 = vmul.f32 %v1614_v6, %v3608_v62  ;;  %v1623_v8 = vmul.f32 %v1615_v57, %v3625_v5  ;;  %v3893_v32 = vadd.f32 10619610.0, %v1618_v23  ;;  %v3897_v63 = vadd.f32 10619610.0, %v1619_v19 }
 0x322   : > { %v1624_v59 = vmul.f32 %v1616_v34, %v3618_v3  ;;  %v1625_v28 = vmul.f32 %v1617_v0, %v3635_v21  ;;  %v3899_v49 = vadd.f32 10619610.0, %v1620_v2  ;;  %v3901_v45 = vadd.f32 10619610.0, %v1621_v25 }
 0x323   : > { %v3903_v44 = vadd.f32 10619610.0, %v1622_v43  ;;  %v3905_v56 = vadd.f32 10619610.0, %v1623_v8  ;;  %v1642_v50 = vmul.f32 %v3832_v10, %v3555_v22  ;;  %v1635_v17 = vadd.f32 36.0, %v3566_v36 }
 0x324   : > { %v3909_v39 = vadd.f32 10619610.0, %v1624_v59  ;;  %v3911_v48 = vadd.f32 10619610.0, %v1625_v28  ;;  %v1636_v6 = vadd.f32 36.0, %v3562_v31  ;;  %v1637_v57 = vadd.f32 36.0, %v3573_v40 }
 0x325   : > { %4372 = vst [vmem:[#allocation51_spill] sm:$0xff] %v3905_v56  ;;  %v1638_v23 = vadd.f32 36.0, %v3608_v62  ;;  %v1639_v34 = vadd.f32 36.0, %v3625_v5  ;;  %v1640_v0 = vadd.f32 36.0, %v3618_v3  ;;  %v1641_v19 = vadd.f32 36.0, %v3635_v21 }
 0x326   : > { %4373 = vst [vmem:[#allocation52_spill] sm:$0xff] %v3909_v39  ;;  %4374 = vst [vmem:[#allocation53_spill] sm:$0xff] %v3911_v48  ;;  %v1643_v10 = vmul.f32 %v1635_v17, %v3566_v36  ;;  %v1644_v2 = vmul.f32 %v1636_v6, %v3562_v31  ;;  %v1650_v25 = vadd.f32 546.0, %v1642_v50  ;;  %v1645_v43 = vmul.f32 %v1637_v57, %v3573_v40 }
 0x327   : > { %v1646_v8 = vmul.f32 %v1638_v23, %v3608_v62  ;;  %v1647_v59 = vmul.f32 %v1639_v34, %v3625_v5  ;;  %v1648_v28 = vmul.f32 %v1640_v0, %v3618_v3  ;;  %v1649_v61 = vmul.f32 %v1641_v19, %v3635_v21 }
 0x328   : > { %v1651_v48 = vadd.f32 546.0, %v1643_v10  ;;  %v1652_v9 = vadd.f32 546.0, %v1644_v2  ;;  %v1658_v38 = vmul.f32 %v1650_v25, %v3555_v22  ;;  %v1653_v39 = vadd.f32 546.0, %v1645_v43 }
 0x329   : > { %v1654_v12 = vadd.f32 546.0, %v1646_v8  ;;  %v1655_v17 = vadd.f32 546.0, %v1647_v59  ;;  %v1656_v56 = vadd.f32 546.0, %v1648_v28  ;;  %v1657_v6 = vadd.f32 546.0, %v1649_v61 }
 0x32a   : > { %v1659_v50 = vmul.f32 %v1651_v48, %v3566_v36  ;;  %v1660_v57 = vmul.f32 %v1652_v9, %v3562_v31  ;;  %v1666_v23 = vadd.f32 4536.0, %v1658_v38  ;;  %v1661_v34 = vmul.f32 %v1653_v39, %v3573_v40 }
 0x32b   : > { %v1662_v0 = vmul.f32 %v1654_v12, %v3608_v62  ;;  %v1663_v19 = vmul.f32 %v1655_v17, %v3625_v5  ;;  %v1664_v10 = vmul.f32 %v1656_v56, %v3618_v3  ;;  %v1665_v2 = vmul.f32 %v1657_v6, %v3635_v21 }
 0x32c   : > { %v1667_v25 = vadd.f32 4536.0, %v1659_v50  ;;  %v1668_v43 = vadd.f32 4536.0, %v1660_v57  ;;  %v1674_v8 = vmul.f32 %v1666_v23, %v3555_v22  ;;  %v1669_v61 = vadd.f32 4536.0, %v1661_v34 }
 0x32d   : > { %v1670_v59 = vadd.f32 4536.0, %v1662_v0  ;;  %v1671_v48 = vadd.f32 4536.0, %v1663_v19  ;;  %v1672_v28 = vadd.f32 4536.0, %v1664_v10  ;;  %v1673_v9 = vadd.f32 4536.0, %v1665_v2 }
 0x32e   : > { %v1675_v38 = vmul.f32 %v1667_v25, %v3566_v36  ;;  %v1676_v39 = vmul.f32 %v1668_v43, %v3562_v31  ;;  %v1682_v12 = vadd.f32 22449.0, %v1674_v8  ;;  %v1677_v17 = vmul.f32 %v1669_v61, %v3573_v40 }
 0x32f   : > { %v1678_v56 = vmul.f32 %v1670_v59, %v3608_v62  ;;  %v1679_v6 = vmul.f32 %v1671_v48, %v3625_v5  ;;  %v1680_v50 = vmul.f32 %v1672_v28, %v3618_v3  ;;  %v1681_v57 = vmul.f32 %v1673_v9, %v3635_v21 }
 0x330   : > { %v1683_v23 = vadd.f32 22449.0, %v1675_v38  ;;  %v1684_v34 = vadd.f32 22449.0, %v1676_v39  ;;  %v1690_v0 = vmul.f32 %v1682_v12, %v3555_v22  ;;  %v1685_v19 = vadd.f32 22449.0, %v1677_v17 }
 0x331   : > { %v1686_v10 = vadd.f32 22449.0, %v1678_v56  ;;  %v1687_v2 = vadd.f32 22449.0, %v1679_v6  ;;  %v1688_v25 = vadd.f32 22449.0, %v1680_v50  ;;  %2669 = vlog2.f32 %v3597_v26 }
 0x332   : > { %v1689_v43 = vadd.f32 22449.0, %v1681_v57  ;;  %v1691_v8 = vmul.f32 %v1683_v23, %v3566_v36  ;;  %v1692_v61 = vmul.f32 %v1684_v34, %v3562_v31  ;;  %v1693_v59 = vmul.f32 %v1685_v19, %v3573_v40 }
 0x333   : > { %v1694_v48 = vmul.f32 %v1686_v10, %v3608_v62  ;;  %v1695_v28 = vmul.f32 %v1687_v2, %v3625_v5  ;;  %v1698_v9 = vadd.f32 67284.0, %v1690_v0  ;;  %v1696_v38 = vmul.f32 %v1688_v25, %v3618_v3 }
 0x334   : > { %v1697_v39 = vmul.f32 %v1689_v43, %v3635_v21  ;;  %v1699_v12 = vadd.f32 67284.0, %v1691_v8  ;;  %v1700_v17 = vadd.f32 67284.0, %v1692_v61  ;;  %v1701_v56 = vadd.f32 67284.0, %v1693_v59 }
 0x335   : > { %v1702_v6 = vadd.f32 67284.0, %v1694_v48  ;;  %v1703_v50 = vadd.f32 67284.0, %v1695_v28  ;;  %v1706_v57 = vmul.f32 %v1698_v9, %v3555_v22  ;;  %v1704_v23 = vadd.f32 67284.0, %v1696_v38 }
 0x336   : > { %v1705_v34 = vadd.f32 67284.0, %v1697_v39  ;;  %v1707_v19 = vmul.f32 %v1699_v12, %v3566_v36  ;;  %v1708_v10 = vmul.f32 %v1700_v17, %v3562_v31  ;;  %v1709_v2 = vmul.f32 %v1701_v56, %v3573_v40 }
 0x337   : > { %v1710_v0 = vmul.f32 %v1702_v6, %v3608_v62  ;;  %v1711_v25 = vmul.f32 %v1703_v50, %v3625_v5  ;;  %v1714_v43 = vadd.f32 118124.0, %v1706_v57  ;;  %v1712_v8 = vmul.f32 %v1704_v23, %v3618_v3 }
 0x338   : > { %v1713_v61 = vmul.f32 %v1705_v34, %v3635_v21  ;;  %v1715_v59 = vadd.f32 118124.0, %v1707_v19  ;;  %v1716_v48 = vadd.f32 118124.0, %v1708_v10  ;;  %v1717_v28 = vadd.f32 118124.0, %v1709_v2 }
 0x339   : > { %v1718_v9 = vadd.f32 118124.0, %v1710_v0  ;;  %v1719_v38 = vadd.f32 118124.0, %v1711_v25  ;;  %v1722_v39 = vmul.f32 %v1714_v43, %v3555_v22  ;;  %v1720_v12 = vadd.f32 118124.0, %v1712_v8 }
 0x33a   : > { %v1721_v17 = vadd.f32 118124.0, %v1713_v61  ;;  %v1723_v56 = vmul.f32 %v1715_v59, %v3566_v36  ;;  %v1724_v6 = vmul.f32 %v1716_v48, %v3562_v31  ;;  %v1725_v50 = vmul.f32 %v1717_v28, %v3573_v40 }
 0x33b   : > { %v1726_v57 = vmul.f32 %v1718_v9, %v3608_v62  ;;  %v1727_v23 = vmul.f32 %v1719_v38, %v3625_v5  ;;  %v1730_v34 = vadd.f32 109584.0, %v1722_v39  ;;  %v1728_v19 = vmul.f32 %v1720_v12, %v3618_v3 }
 0x33c   : > { %v1729_v10 = vmul.f32 %v1721_v17, %v3635_v21  ;;  %v1731_v2 = vadd.f32 109584.0, %v1723_v56  ;;  %v1732_v0 = vadd.f32 109584.0, %v1724_v6  ;;  %v1733_v25 = vadd.f32 109584.0, %v1725_v50 }
 0x33d   : > { %v1734_v43 = vadd.f32 109584.0, %v1726_v57  ;;  %v1735_v8 = vadd.f32 109584.0, %v1727_v23  ;;  %v1738_v61 = vmul.f32 %v1730_v34, %v3555_v22  ;;  %v1736_v59 = vadd.f32 109584.0, %v1728_v19 }
 0x33e   : > { %v1737_v48 = vadd.f32 109584.0, %v1729_v10  ;;  %v1739_v28 = vmul.f32 %v1731_v2, %v3566_v36  ;;  %v1740_v9 = vmul.f32 %v1732_v0, %v3562_v31  ;;  %v1741_v38 = vmul.f32 %v1733_v25, %v3573_v40 }
 0x33f   : > { %v1742_v39 = vmul.f32 %v1734_v43, %v3608_v62  ;;  %v1743_v12 = vmul.f32 %v1735_v8, %v3625_v5  ;;  %v3976_v17 = vadd.f32 40320.0, %v1738_v61  ;;  %v1744_v56 = vmul.f32 %v1736_v59, %v3618_v3 }
 0x340   : > { %v1745_v6 = vmul.f32 %v1737_v48, %v3635_v21  ;;  %v3980_v50 = vadd.f32 40320.0, %v1739_v28  ;;  %v3982_v57 = vadd.f32 40320.0, %v1740_v9  ;;  %v3984_v23 = vadd.f32 40320.0, %v1741_v38 }
 0x341   : > { %v3986_v34 = vadd.f32 40320.0, %v1742_v39  ;;  %v3988_v19 = vadd.f32 40320.0, %v1743_v12  ;;  %v1754_v10 = vadd.f32 0.5, %v3542_v4  ;;  %v3991_v2 = vadd.f32 40320.0, %v1744_v56 }
 0x342   : > { %v3993_v0 = vadd.f32 40320.0, %v1745_v6  ;;  %v1755_v25 = vadd.f32 0.5, %v3550_v14  ;;  %v1756_v43 = vadd.f32 0.5, %v3547_v13  ;;  %v1757_v8 = vadd.f32 0.5, %v3557_v24 }
 0x343   : > { %v1758_v61 = vadd.f32 0.5, %v3590_v52  ;;  %v1759_v59 = vadd.f32 0.5, %v3604_v55  ;;  %v1760_v48 = vadd.f32 0.5, %v3599_v58  ;;  %v1761_v28 = vadd.f32 0.5, %v3614_v1 }
 0x344   : > { %4375 = vst [vmem:[#allocation54_spill] sm:$0xff] %v3993_v0  ;;  %v1763_v9 = vmul.f32 0.6931472, %v3680_v46  ;;  %v1765_v38 = vmul.f32 0.6931472, %v3683_v18  ;;  %v1794_v39 = vadd.f32 0.5, %v3555_v22  ;;  %2671 = vlog2.f32 %v3631_v7 }
 0x345   : > { %v1767_v12 = vmul.f32 0.6931472, %v3693_v41  ;;  %v1769_v56 = vmul.f32 0.6931472, %v3703_v33  ;;  %v1771_v6 = vmul.f32 0.6931472, %v3761_v35  ;;  %2673 = vlog2.f32 %v3645_v29 }
 0x346   : > { %v1773_v55 = vmul.f32 0.6931472, %v3791_v60  ;;  %v1775_v58 = vmul.f32 0.6931472, %v3801_v11  ;;  %v1777_v1 = vmul.f32 0.6931472, %v3825_v30  ;;  %v1778_v52 = vmul.f32 %v1763_v9, %v1754_v10 }
 0x347   : > { %v1779_v46 = vmul.f32 %v1765_v38, %v1755_v25  ;;  %v1780_v24 = vmul.f32 %v1767_v12, %v1756_v43  ;;  %v1781_v18 = vmul.f32 %v1769_v56, %v1757_v8  ;;  %v1782_v13 = vmul.f32 %v1771_v6, %v1758_v61  ;;  %v4379_v38 = vld [vmem:[#allocation40_spill] sm:$0xff]  ;;  %v4384_v56 = vld [vmem:[#allocation45_spill] sm:$0xff] }
 0x348   : > { %v1783_v14 = vmul.f32 %v1773_v55, %v1759_v59  ;;  %v1784_v22 = vmul.f32 %v1775_v58, %v1760_v48  ;;  %v1785_v41 = vmul.f32 %v1777_v1, %v1761_v28  ;;  %v1786_v4 = vadd.f32 1.837877, %v1778_v52  ;;  %v4377_v28 = vld [vmem:[#allocation41_spill] sm:$0xff] }
 0x349   : > { %v1787_v33 = vadd.f32 1.837877, %v1779_v46  ;;  %v4012_v0 = vadd.f32 1.837877, %v1780_v24  ;;  %v4014_v35 = vadd.f32 1.837877, %v1781_v18  ;;  %v1850_v25 = vmul.f32 %v3893_v32, %v3719_v15 }
 0x34a   : > { %v4017_v60 = vadd.f32 1.837877, %v1782_v13  ;;  %v4019_v11 = vadd.f32 1.837877, %v1783_v14  ;;  %v4021_v30 = vadd.f32 1.837877, %v1784_v22  ;;  %v1851_v43 = vmul.f32 %v3897_v63, %v3722_v16 }
 0x34b   : > { %v4024_v10 = vadd.f32 1.837877, %v1785_v41  ;;  %v1795_v58 = vadd.f32 0.5, %v3566_v36  ;;  %v1796_v52 = vadd.f32 0.5, %v3562_v31  ;;  %v1797_v24 = vadd.f32 0.5, %v3573_v40  ;;  %v4376_v15 = vld [vmem:[#allocation51_spill] sm:$0xff] }
 0x34c   : > { %v4030_v55 = vadd.f32 0.5, %v3608_v62  ;;  %v4033_v13 = vadd.f32 0.5, %v3625_v5  ;;  %v4036_v14 = vadd.f32 0.5, %v3618_v3  ;;  %v4039_v22 = vadd.f32 0.5, %v3635_v21  ;;  %v4378_v16 = vld [vmem:[#allocation52_spill] sm:$0xff]  ;;  %v4385_v46 = vld [vmem:[#allocation46_spill] sm:$0xff] }
 0x34d   : > { %v1803_v1 = vmul.f32 0.6931472, %v3963_v27  ;;  %v1852_v8 = vmul.f32 %v3899_v49, %v3724_v37  ;;  %v1853_v61 = vmul.f32 %v3901_v45, %v3726_v42  ;;  %v1854_v59 = vmul.f32 %v3903_v44, %v3728_v47  ;;  %v2666_v27 = vpop.eup %2665  ;;  %v4380_v37 = vld [vmem:[#allocation42_spill] sm:$0xff]  ;;  %v4381_v49 = vld [vmem:[#allocation53_spill] sm:$0xff]  ;;  %v4382_v42 = vld [vmem:[#allocation43_spill] sm:$0xff] }
 0x34e   : > { %2675 = vlog2.f32 %v3641_v20  ;;  %v1855_v32 = vmul.f32 %v4376_v15, %v3730_v53  ;;  %v1856_v63 = vmul.f32 %v4378_v16, %v4377_v28  ;;  %v1805_v9 = vmul.f32 0.6931472, %v2666_v27  ;;  %v4383_v44 = vld [vmem:[#allocation44_spill] sm:$0xff]  ;;  %v4386_v41 = vld [vmem:[#allocation47_spill] sm:$0xff]  ;;  %v2668_v27 = vpop.eup %2667  ;;  %v4390_v15 = vld [vmem:[#allocation50_spill] sm:$0xff] }
 0x34f   : > { %v1818_v48 = vmul.f32 %v1803_v1, %v1794_v39  ;;  %2677 = vlog2.f32 %v4379_v38  ;;  %v1857_v12 = vmul.f32 %v4381_v49, %v4380_v37  ;;  %v1882_v45 = vmul.f32 %v3976_v17, %v4382_v42  ;;  %v4387_v17 = vld [vmem:[#allocation27_spill] sm:$0xff]  ;;  %v4391_v28 = vld [vmem:[#allocation54_spill] sm:$0xff]  ;;  %v4394_v49 = vld [vmem:[#allocation25_spill] sm:$0xff] }
 0x350   : > { %2679 = vlog2.f32 %v1850_v25  ;;  %v1883_v39 = vmul.f32 %v3980_v50, %v4383_v44  ;;  %v1884_v53 = vmul.f32 %v3982_v57, %v4384_v56  ;;  %v1819_v6 = vmul.f32 %v1805_v9, %v1795_v58  ;;  %v4388_v25 = vld [vmem:[#allocation48_spill] sm:$0xff]  ;;  %v2670_v58 = vpop.eup %2669  ;;  %v4392_v9 = vld [vmem:[#allocation31_spill] sm:$0xff] }
 0x351   : > { %v1826_v47 = vadd.f32 %v1818_v48, %v1786_v4  ;;  %2681 = vlog2.f32 %v1851_v43  ;;  %v4070_v18 = vmul.f32 %v3984_v23, %v4385_v46  ;;  %v4074_v1 = vmul.f32 %v3986_v34, %v4386_v41  ;;  %v4389_v48 = vld [vmem:[#allocation49_spill] sm:$0xff]  ;;  %v4396_v44 = vld [vmem:[#allocation24_spill] sm:$0xff] }
 0x352   : > { %2683 = vlog2.f32 %v1852_v8  ;;  %v4079_v50 = vmul.f32 %v3988_v19, %v4388_v25  ;;  %v4083_v57 = vmul.f32 %v3991_v2, %v4389_v48  ;;  %v1807_v43 = vmul.f32 0.6931472, %v2668_v27  ;;  %v4393_v8 = vld [vmem:[#allocation22_spill] sm:$0xff] }
 0x353   : > { %v1834_v4 = vsub.f32 %v1826_v47, %v4387_v17  ;;  %v1827_v23 = vadd.f32 %v1819_v6, %v1787_v33  ;;  %2685 = vlog2.f32 %v1853_v61  ;;  %v4087_v34 = vmul.f32 %v4391_v28, %v4390_v15  ;;  %v4395_v47 = vld [vmem:[#allocation28_spill] sm:$0xff]  ;;  %v2672_v61 = vpop.eup %2671  ;;  %v4397_v6 = vld [vmem:[#allocation23_spill] sm:$0xff]  ;;  %v4400_v15 = vld [vmem:[#allocation29_spill] sm:$0xff] }
 0x354   : > { %v1809_v16 = vmul.f32 0.6931472, %v2670_v58  ;;  %2687 = vlog2.f32 %v1854_v59  ;;  %v4092_v19 = vmul.f32 %v4394_v49, %v4393_v8  ;;  %v1820_v42 = vmul.f32 %v1807_v43, %v1796_v52  ;;  %v4398_v59 = vld [vmem:[#allocation26_spill] sm:$0xff]  ;;  %v2674_v27 = vpop.eup %2673 }
 0x355   : > { %v1842_v37 = vsub.f32 %v1834_v4, %v4392_v9  ;;  %v1835_v2 = vsub.f32 %v1827_v23, %v4395_v47  ;;  %2689 = vlog2.f32 %v1855_v32  ;;  %v4097_v33 = vmul.f32 %v3566_v36, %v4396_v44 }
 0x356   : > { %v1821_v56 = vmul.f32 %v1809_v16, %v1797_v24  ;;  %2691 = vlog2.f32 %v1856_v63  ;;  %v4101_v46 = vmul.f32 %v3562_v31, %v4397_v6  ;;  %v4105_v41 = vmul.f32 %v3573_v40, %v4398_v59  ;;  %v4399_v63 = vld [vmem:[#allocation32_spill] sm:$0xff] }
 0x357   : > { %v1811_v52 = vmul.f32 0.6931472, %v2672_v61  ;;  %v1828_v17 = vadd.f32 %v1820_v42, %v4012_v0  ;;  %v1843_v32 = vsub.f32 %v1835_v2, %v3588_v51  ;;  %2693 = vlog2.f32 %v1857_v12  ;;  %v4401_v12 = vld [vmem:[#allocation30_spill] sm:$0xff] }
 0x358   : > { %v2676_v4 = vpop.eup %2675  ;;  %v1813_v25 = vmul.f32 0.6931472, %v2674_v27  ;;  %v1829_v24 = vadd.f32 %v1821_v56, %v4014_v35  ;;  %2695 = vlog2.f32 %v1882_v45  ;;  %v4112_v48 = vmul.f32 %v3608_v62, %v4399_v63 }
 0x359   : > { %v2678_v58 = vpop.eup %2677  ;;  %v1815_v43 = vmul.f32 0.6931472, %v2676_v4  ;;  %v1822_v23 = vmul.f32 %v1811_v52, %v4030_v55  ;;  %v1836_v28 = vsub.f32 %v1828_v17, %v4400_v15  ;;  %2697 = vlog2.f32 %v1883_v39 }
 0x35a   : > { %v2680_v0 = vpop.eup %2679  ;;  %v1817_v16 = vmul.f32 0.6931472, %v2678_v58  ;;  %v1823_v51 = vmul.f32 %v1813_v25, %v4033_v13  ;;  %v1837_v9 = vsub.f32 %v1829_v24, %v4401_v12  ;;  %2699 = vlog2.f32 %v1884_v53  ;;  %v4402_v53 = vld [vmem:[#allocation35_spill] sm:$0xff]  ;;  %v4403_v25 = vld [vmem:[#allocation38_spill] sm:$0xff] }
 0x35b   : > { %v2682_v35 = vpop.eup %2681  ;;  %v1824_v45 = vmul.f32 %v1815_v43, %v4036_v14  ;;  %v1830_v42 = vadd.f32 %v1822_v23, %v4017_v60  ;;  %v1844_v47 = vsub.f32 %v1836_v28, %v3594_v54  ;;  %v1859_v2 = vmul.f32 0.6931472, %v2680_v0  ;;  %v4404_v43 = vld [vmem:[#allocation37_spill] sm:$0xff]  ;;  %v4405_v0 = vld [vmem:[#allocation39_spill] sm:$0xff] }
 0x35c   : > { %v2684_v61 = vpop.eup %2683  ;;  %v1825_v55 = vmul.f32 %v1817_v16, %v4039_v22  ;;  %v1831_v39 = vadd.f32 %v1823_v51, %v4019_v11  ;;  %v1845_v56 = vsub.f32 %v1837_v9, %v3597_v26  ;;  %v1861_v27 = vmul.f32 0.6931472, %v2682_v35 }
 0x35d   : > { %v2686_v13 = vpop.eup %2685  ;;  %v1832_v52 = vadd.f32 %v1824_v45, %v4021_v30  ;;  %v1838_v17 = vsub.f32 %v1830_v42, %v4402_v53  ;;  %v1863_v4 = vmul.f32 0.6931472, %v2684_v61  ;;  %v4126_v14 = vadd.f32 %v1859_v2, %v1842_v37 }
 0x35e   : > { %v2688_v60 = vpop.eup %2687  ;;  %v1833_v54 = vadd.f32 %v1825_v55, %v4024_v10  ;;  %v1839_v24 = vsub.f32 %v1831_v39, %v4403_v25  ;;  %v1865_v58 = vmul.f32 0.6931472, %v2686_v13  ;;  %v4130_v22 = vadd.f32 %v1861_v27, %v1843_v32  ;;  %v4408_v13 = vld [vmem:[#allocation36_spill] sm:$0xff] }
 0x35f   : > { %v2690_v11 = vpop.eup %2689  ;;  %v1840_v26 = vsub.f32 %v1832_v52, %v4404_v43  ;;  %v1846_v23 = vsub.f32 %v1838_v17, %v3631_v7  ;;  %v1867_v15 = vmul.f32 0.6931472, %v2688_v60  ;;  %v4134_v30 = vadd.f32 %v1863_v4, %v1844_v47  ;;  %v4413_v43 = vld [vmem:[#allocation15_spill] sm:$0xff] }
 0x360   : > { %v2692_v28 = vpop.eup %2691  ;;  %v1841_v37 = vsub.f32 %v1833_v54, %v4405_v0  ;;  %v1847_v16 = vsub.f32 %v1839_v24, %v3645_v29  ;;  %v1869_v51 = vmul.f32 0.6931472, %v2690_v11  ;;  %v4138_v10 = vadd.f32 %v1865_v58, %v1845_v56  ;;  %v4410_v58 = vld [vmem:[#allocation6_spill] sm:$0xff] }
 0x361   : > { %v2694_v12 = vpop.eup %2693  ;;  %v1848_v32 = vsub.f32 %v1840_v26, %v3641_v20  ;;  %v1871_v9 = vmul.f32 0.6931472, %v2692_v28  ;;  %v4141_v35 = vadd.f32 %v1867_v15, %v1846_v23  ;;  %2701 = vlog2.f32 %v4070_v18  ;;  %v4406_v20 = vld [vmem:[#allocation34_spill] sm:$0xff] }
 0x362   : > { %v2696_v7 = vpop.eup %2695  ;;  %v1849_v45 = vsub.f32 %v1841_v37, %v4379_v38  ;;  %v1873_v42 = vmul.f32 0.6931472, %v2694_v12  ;;  %v4145_v47 = vadd.f32 %v1869_v51, %v1847_v16  ;;  %2703 = vlog2.f32 %v4074_v1  ;;  %v4407_v38 = vld [vmem:[#allocation33_spill] sm:$0xff]  ;;  %v4412_v11 = vld [vmem:[#allocation10_spill] sm:$0xff] }
 0x363   : > { %v2698_v29 = vpop.eup %2697  ;;  %v4148_v2 = vadd.f32 %v1871_v9, %v1848_v32  ;;  %v4150_v61 = vmul.f32 0.6931472, %v2696_v7  ;;  %2705 = vlog2.f32 %v4079_v50  ;;  %v1919_v55 = vmul.f32 %v3625_v5, %v4406_v20  ;;  %v4414_v23 = vld [vmem:[#allocation14_spill] sm:$0xff] }
 0x364   : > { %v2700_v39 = vpop.eup %2699  ;;  %v4155_v18 = vadd.f32 %v1873_v42, %v1849_v45  ;;  %v4157_v56 = vmul.f32 0.6931472, %v2698_v29  ;;  %2707 = vlog2.f32 %v4083_v57  ;;  %v1920_v1 = vmul.f32 %v3618_v3, %v4407_v38  ;;  %v4416_v0 = vld [vmem:[#allocation18_spill] sm:$0xff] }
 0x365   : > { %v4162_v27 = vmul.f32 0.6931472, %v2700_v39  ;;  %2709 = vlog2.f32 %v4087_v34  ;;  %v1906_v50 = vsub.f32 %v4126_v14, %v4150_v61  ;;  %v1921_v52 = vmul.f32 %v3635_v21, %v4408_v13 }
 0x366   : > { %v1907_v53 = vsub.f32 %v4130_v22, %v4157_v56  ;;  %2711 = vlog2.f32 %v4092_v19  ;;  %v2216_v57 = vadd.f32 -1.0, %v4393_v8  ;;  %v2217_v17 = vadd.f32 -1.0, %v4396_v44  ;;  %v4409_v44 = vld [vmem:[#allocation7_spill] sm:$0xff] }
 0x367   : > { %v1908_v4 = vsub.f32 %v4134_v30, %v4162_v27  ;;  %2713 = vlog2.f32 %v4097_v33  ;;  %v2218_v34 = vadd.f32 -1.0, %v4397_v6  ;;  %v2219_v60 = vadd.f32 -1.0, %v4398_v59  ;;  %v4411_v6 = vld [vmem:[#allocation12_spill] sm:$0xff] }
 0x368   : > { %2715 = vlog2.f32 %v4101_v46  ;;  %v2220_v54 = vadd.f32 -1.0, %v4399_v63  ;;  %v2221_v25 = vadd.f32 -1.0, %v4406_v20  ;;  %v2222_v19 = vadd.f32 -1.0, %v4407_v38 }
 0x369   : > { %2717 = vlog2.f32 %v4105_v41  ;;  %v2223_v8 = vadd.f32 -1.0, %v4408_v13  ;;  %v1978_v24 = vmul.f32 %v2216_v57, %v4409_v44  ;;  %v1979_v33 = vmul.f32 %v2217_v17, %v4410_v58  ;;  %v4415_v41 = vld [vmem:[#allocation20_spill] sm:$0xff]  ;;  %v4417_v57 = vld [vmem:[#allocation9_spill] sm:$0xff] }
 0x36a   : > { %2719 = vlog2.f32 %v4112_v48  ;;  %v1980_v59 = vmul.f32 %v2218_v34, %v4411_v6  ;;  %v1981_v46 = vmul.f32 %v2219_v60, %v4412_v11  ;;  %v4191_v63 = vmul.f32 %v2220_v54, %v4413_v43  ;;  %v4418_v34 = vld [vmem:[#allocation8_spill] sm:$0xff]  ;;  %v4419_v54 = vld [vmem:[#allocation13_spill] sm:$0xff] }
 0x36b   : > { %v2702_v26 = vpop.eup %2701  ;;  %2721 = vlog2.f32 %v1919_v55  ;;  %v4194_v15 = vmul.f32 %v2221_v25, %v4414_v23  ;;  %v4197_v28 = vmul.f32 %v2222_v19, %v4415_v41  ;;  %v4200_v37 = vmul.f32 %v2223_v8, %v4416_v0  ;;  %v4420_v19 = vld [vmem:[#allocation11_spill] sm:$0xff]  ;;  %v4421_v44 = vld [vmem:[#allocation17_spill] sm:$0xff]  ;;  %v4422_v6 = vld [vmem:[#allocation16_spill] sm:$0xff] }
 0x36c   : > { %v2704_v16 = vpop.eup %2703  ;;  %v1897_v48 = vmul.f32 0.6931472, %v2702_v26  ;;  %2723 = vlog2.f32 %v1920_v1  ;;  %v2224_v51 = vadd.f32 -1.0, %v4394_v49  ;;  %v2225_v12 = vadd.f32 -1.0, %v3566_v36  ;;  %v4424_v41 = vld [vmem:[#allocation19_spill] sm:$0xff] }
 0x36d   : > { %v2706_v32 = vpop.eup %2705  ;;  %v1899_v9 = vmul.f32 0.6931472, %v2704_v16  ;;  %2725 = vlog2.f32 %v1921_v52  ;;  %v2226_v7 = vadd.f32 -1.0, %v3562_v31  ;;  %v2227_v45 = vadd.f32 -1.0, %v3573_v40 }
 0x36e   : > { %v2708_v42 = vpop.eup %2707  ;;  %v1901_v29 = vmul.f32 0.6931472, %v2706_v32  ;;  %v1909_v20 = vsub.f32 %v4138_v10, %v1897_v48  ;;  %v2228_v55 = vadd.f32 -1.0, %v3608_v62  ;;  %v2229_v39 = vadd.f32 -1.0, %v3625_v5 }
 0x36f   : > { %v2710_v38 = vpop.eup %2709  ;;  %v1903_v1 = vmul.f32 0.6931472, %v2708_v42  ;;  %v1910_v49 = vsub.f32 %v4141_v35, %v1899_v9  ;;  %v2230_v36 = vadd.f32 -1.0, %v3618_v3  ;;  %v2231_v13 = vadd.f32 -1.0, %v3635_v21 }
 0x370   : > { %v2712_v52 = vpop.eup %2711  ;;  %v1905_v31 = vmul.f32 0.6931472, %v2710_v38  ;;  %v1911_v40 = vsub.f32 %v4145_v47, %v1901_v29  ;;  %v2018_v17 = vmul.f32 %v2224_v51, %v4417_v57  ;;  %v2019_v10 = vmul.f32 %v2225_v12, %v4418_v34 }
 0x371   : > { %v2714_v60 = vpop.eup %2713  ;;  %v1912_v62 = vsub.f32 %v4148_v2, %v1903_v1  ;;  %v1923_v5 = vmul.f32 0.6931472, %v2712_v52  ;;  %v2020_v25 = vmul.f32 %v2226_v7, %v4419_v54  ;;  %v2021_v35 = vmul.f32 %v2227_v45, %v4420_v19  ;;  %v4423_v2 = vld [vmem:[#allocation21_spill] sm:$0xff] }
 0x372   : > { %v2716_v8 = vpop.eup %2715  ;;  %v1913_v3 = vsub.f32 %v4155_v18, %v1905_v31  ;;  %v1925_v21 = vmul.f32 0.6931472, %v2714_v60  ;;  %v2022_v58 = vmul.f32 %v2228_v55, %v4421_v44  ;;  %v2023_v47 = vmul.f32 %v2229_v39, %v4422_v6 }
 0x373   : > { %v2718_v11 = vpop.eup %2717  ;;  %v1927_v43 = vmul.f32 0.6931472, %v2716_v8  ;;  %v1938_v26 = vsub.f32 %v1906_v50, %v1923_v5  ;;  %v2024_v23 = vmul.f32 %v2230_v36, %v4423_v2  ;;  %v2025_v0 = vmul.f32 %v2231_v13, %v4424_v41 }
 0x374   : > { %v2720_v16 = vpop.eup %2719  ;;  %v1929_v48 = vmul.f32 0.6931472, %v2718_v11  ;;  %v1939_v18 = vsub.f32 %v1907_v53, %v1925_v21  ;;  %v2026_v51 = vadd.f32 %v2018_v17, %v1978_v24  ;;  %v2027_v12 = vadd.f32 %v2019_v10, %v1979_v33 }
 0x375   : > { %v2722_v32 = vpop.eup %2721  ;;  %v1931_v9 = vmul.f32 0.6931472, %v2720_v16  ;;  %v1940_v7 = vsub.f32 %v1908_v4, %v1927_v43  ;;  %v2208_v14 = vadd.f32 -359.13422, %v1938_v26  ;;  %v2028_v61 = vadd.f32 %v2020_v25, %v1980_v59 }
 0x376   : > { %v2724_v50 = vpop.eup %2723  ;;  %v1933_v45 = vmul.f32 0.6931472, %v2722_v32  ;;  %v1941_v42 = vsub.f32 %v1909_v20, %v1929_v48  ;;  %v2209_v29 = vadd.f32 -359.13422, %v1939_v18  ;;  %v2029_v55 = vadd.f32 %v2021_v35, %v1981_v46 }
 0x377   : > { %v2726_v39 = vpop.eup %2725  ;;  %v1935_v38 = vmul.f32 0.6931472, %v2724_v50  ;;  %v1942_v1 = vsub.f32 %v1910_v49, %v1931_v9  ;;  %v2210_v22 = vadd.f32 -359.13422, %v1940_v7  ;;  %v2030_v56 = vadd.f32 %v2022_v58, %v4191_v63 }
 0x378   : > { %v1937_v53 = vmul.f32 0.6931472, %v2726_v39  ;;  %v1943_v24 = vsub.f32 %v1911_v40, %v1933_v45  ;;  %v2211_v33 = vadd.f32 -359.13422, %v1941_v42  ;;  %v2031_v36 = vadd.f32 %v2023_v47, %v4194_v15 }
 0x379   : > { %v1944_v30 = vsub.f32 %v1912_v62, %v1935_v38  ;;  %v2212_v27 = vadd.f32 -359.13422, %v1942_v1  ;;  %v2032_v4 = vadd.f32 %v2024_v23, %v4197_v28  ;;  %v2033_v59 = vadd.f32 %v2025_v0, %v4200_v37 }
 0x37a   : > { %v1945_v20 = vsub.f32 %v1913_v3, %v1937_v53  ;;  %v2213_v13 = vadd.f32 -359.13422, %v1943_v24  ;;  %v2034_v46 = vsub.f32 %v2026_v51, %v2208_v14  ;;  %v2035_v52 = vsub.f32 %v2027_v12, %v2209_v29 }
 0x37b   : > { %v2214_v31 = vadd.f32 -359.13422, %v1944_v30  ;;  %v2036_v49 = vsub.f32 %v2028_v61, %v2210_v22  ;;  %v2037_v57 = vsub.f32 %v2029_v55, %v2211_v33  ;;  %v2038_v63 = vsub.f32 %v2030_v56, %v2212_v27 }
 0x37c   : > { %v2215_v40 = vadd.f32 -359.13422, %v1945_v20  ;;  %v2039_v17 = vsub.f32 %v2031_v36, %v2213_v13  ;;  %v2042_v15 = vadd.f32 %v2035_v52, %v2034_v46 }
 0x37d   : > { %v2040_v34 = vsub.f32 %v2032_v4, %v2214_v31 }
 0x37e   : > { %v2041_v10 = vsub.f32 %v2033_v59, %v2215_v40  ;;  %v2043_v28 = vadd.f32 %v2042_v15, %v2036_v49 }
 0x380   : > { %v2044_v60 = vadd.f32 %v2043_v28, %v2037_v57 }
 0x382   : > { %v2045_v37 = vadd.f32 %v2044_v60, %v2038_v63 }
 0x384   : > { %v2046_v62 = vadd.f32 %v2045_v37, %v2039_v17 }
 0x386   : > { %v2047_v5 = vadd.f32 %v2046_v62, %v2040_v34 }
 0x388   : > { %v2048_v54 = vadd.f32 %v2047_v5, %v2041_v10 }
 0x38a   : > { %2049 = vadd.xlane.f32.xlu0 %v2048_v54 }
 0x38b   : > { %2740 = shalt.err (!%p2737_p3)
}
 0x38c   : > { %s2741_s0 = scalar_lea.hbm %s4240_s14, 1024  ;;  %s2745_s19 = scalar_lea.hbm %s4292_s7, 2048 }
 0x38d   : > { %p2742_p4 = scmp.ne.s32.totalorder %s4240_s14, %s2741_s0  ;;  %p2746_p9 = scmp.lt.u32.totalorder %s4240_s14, %s4292_s7 }
 0x38e   : > { %p2747_p10 = scmp.lt.u32.totalorder %s2745_s19, %s2741_s0  ;;  %p2749_p12 = scmp.lt.u32.totalorder %s2741_s0, %s4240_s14 }
 0x38f   : > { %p2743_p7 = pnand %p2742_p4, %p2881_p5 }
 0x390   : > { %p2748_p11 = por %p2747_p10, %p2746_p9 }
 0x391   : > { %p2744_p8 = pneg %p2743_p7 }
 0x392   : > { %p2750_p13 = por %p2749_p12, %p2748_p11 }
 0x394   : > { %p2751_p0 = pnand %p2750_p13, %p2744_p8 }
 0x396   : > { %2754 = shalt.err (!%p2751_p0)
}
 0x397   : > { %2539 = dma.vmem_to_hbm [thread:$0]  (%p2881_p5), %s2097_s18, 1024, %s4240_s14, %s2078_s20   ;;  %v792_v25 = vpop.xlane.xlu1 %791  ;;  %v786_v19 = vpop.xlane.xlu0 %785  ;;  %vm2065_vm1 = vcmask 7168   ;;  %vm2067_vm2 = vcmask 15368   ;;  %vm2069_vm3 = vcmask 23568   ;;  %vm2071_vm4 = vcmask 31768  }
 0x398   : > { %s342_s11 = sld [smem:[#allocation2]]  ;;  %s332_s27 = scalar_lea.vmem %s4293_s8, %s2201_s28  ;;  %v2053_v35 = vsub.f32 %v792_v25, %v786_v19  ;;  %vm2073_vm5 = vcmask 39968   ;;  %vm2075_vm6 = vcmask 64552   ;;  %v4425_v47 = vmov 0.0  }
 0x39e   : > { %v2054_v8 = vstv %s342_s11 }
 0x39f   : > { %v2055_v44 = vmul.f32 %v2054_v8, %v2053_v35 }
 0x417   : > { %v2050_v3 = vpop.xlane.xlu0 %2049 }
 0x418   : > { %v2051_v21 = vadd.f32 %v2050_v3, %v792_v25  ;;  %2066 = vst.msk [vmem:[%s332_s27] sm:$0xff] %vm2065_vm1, %v2050_v3  ;;  %v2056_v6 = vadd.f32 %v2055_v44, %v2050_v3 }
 0x419   : > { %2068 = vst.msk [vmem:[%s332_s27] sm:$0xff] %vm2067_vm2, %v786_v19 }
 0x41a   : > { %v2052_v58 = vsub.f32 %v2051_v21, %v786_v19  ;;  %2070 = vst.msk [vmem:[%s332_s27] sm:$0xff] %vm2069_vm3, %v792_v25 }
 0x41c   : > { %2072 = vst.msk [vmem:[%s332_s27] sm:$0xff] %vm2071_vm4, %v2052_v58 }
 0x41d   : > { %2074 = vst.msk [vmem:[%s332_s27] sm:$0xff] %vm2073_vm5, %v2056_v6 }
 0x41e   : > { %2076 = vst.msk [vmem:[%s332_s27] sm:$0xff] %vm2075_vm6, %v4425_v47 }
 0x41f PF: > { %p2545_p5 = scmp.ge.s32.totalorder %s2789_s10, 2  ;;  %s2111_s16 = sand.u32 1, %s2777_s29  }
 0x420   : > { %s2112_s13 = scalar_lea.sflag [#allocation4], %s2111_s16 }
 0x421   : > { %p2542_p1 = pnand %p2545_p5, %p2885_p6 }
 0x423   : > { %2772 = dma.done.wait (!%p2542_p1), %s2112_s13, 1024  }
 0x424   : > { %2774 = vsyncadd (!%p2542_p1), %s2112_s13, 4294966272  ;;  %p20_p2 = scmp.ge.s32.totalorder %s2868_s12, 4   ;;  %s4426_s29 = smov %s2781_s30 }
 0x425   : > { %s4427_s30 = smov %s2785_s9  ;;  %s4428_s9 = smov %s2879_s15 }
 0x426   : > { %s4429_s10 = smov %s2868_s12  ;;  %22 = sbr.rel (!%p20_p2) target bundleno = 6 (0x6), region = 98 }
 0x42d   :  { %2124 = vsyncpa [#allocation4], 1 }
 0x42e   :  { %2126 = vsyncpa [#allocation4 + $0x1], 1 }

</bundles_post_ra>
